<compile_context>
chip_gen: v5e
topology: v5e:2x2
jax: 0.10.0
libtpu: 0.0.40
codegen_flags: <defaults>
</compile_context>

<pallas_src>
import functools

import numpy as np
import jax
import jax.numpy as jnp
from jax.experimental import pallas as pl
from jax.experimental.pallas import tpu as pltpu

_SUBLANE = 16  # bf16 sublane pack -> row-tile alignment


def _round_up(x, m):
    return (x + m - 1) // m * m


def _vmem_capacity_bytes():
    """Per-TensorCore VMEM capacity; conservative fallback = v7x (64 MiB)."""
    try:
        info = pltpu.get_tpu_info()
        cap = int(getattr(info, "vmem_capacity_bytes", 0))
        if cap > 0:
            return cap
    except Exception:
        pass
    return 64 << 20


def _fused_stack_kernel(x_ref, *refs, relu_flags):
    """Runs a contiguous chunk of linear layers on one (tm, K) row tile.

    Weights are bf16 (MXU-native rate on v5e/v6e/v7x); accumulation is f32
    via preferred_element_type; inter-layer activations are narrowed back to
    bf16 so the live value between layers stays small.
    """
    o_ref = refs[-1]
    wb_refs = refs[:-1]                       # (w0, b0, w1, b1, ...)

    h = x_ref[...]                            # bf16 row tile
    n_layers = len(relu_flags)
    for i in range(n_layers):
        w = wb_refs[2 * i][...]               # bf16 (K_i, N_i), VMEM-resident
        b = wb_refs[2 * i + 1][...]           # f32  (1,  N_i), row-broadcast
        h = jnp.dot(h, w, preferred_element_type=jnp.float32) + b
        if relu_flags[i]:
            h = jnp.maximum(h, 0.0)
            # TODO(synk): dropout is identity in eval mode; training-mode
            # dropout needs pltpu.prng_seed/prng_random_bits + mask here.
        if i < n_layers - 1:
            h = h.astype(jnp.bfloat16)
    o_ref[...] = h.astype(o_ref.dtype)


def _run_stack(h, group, relu_flags, out_dtype, tm, vmem_cap):
    """One pallas_call running `group` (list of (w_bf16, b_f32)) fused."""
    m_pad, k_in = h.shape
    n_out = group[-1][0].shape[1]

    flat_inputs = []
    wb_specs = []
    resident_bytes = 0
    for w, b in group:
        kf, nf = w.shape
        flat_inputs += [w, b.reshape(1, nf)]
        # Constant block index -> stays resident in VMEM across all M tiles;
        # Buffered(1) drops the useless second pipeline buffer.
        wb_specs.append(
            pl.BlockSpec((kf, nf), lambda i: (0, 0),
                         pipeline_mode=pl.Buffered(1)))
        wb_specs.append(
            pl.BlockSpec((1, nf), lambda i: (0, 0),
                         pipeline_mode=pl.Buffered(1)))
        resident_bytes += kf * nf * w.dtype.itemsize + nf * b.dtype.itemsize

    max_n = max(w.shape[1] for w, _ in group)
    out_itemsize = np.dtype(out_dtype).itemsize
    # Explicit VMEM budget: double-buffered streaming in/out row tiles,
    # single-buffered resident weights, plus f32 + bf16 `h` temporaries.
    footprint = (2 * tm * k_in * h.dtype.itemsize
                 + 2 * tm * n_out * out_itemsize
                 + resident_bytes
                 + tm * max_n * (4 + 2))
    vmem_limit = int(min(max(footprint * 3 // 2 + (4 << 20), 32 << 20),
                         vmem_cap * 9 // 10))

    return pl.pallas_call(
        functools.partial(_fused_stack_kernel, relu_flags=tuple(relu_flags)),
        out_shape=jax.ShapeDtypeStruct((m_pad, n_out), out_dtype),
        grid_spec=pltpu.PrefetchScalarGridSpec(
            num_scalar_prefetch=0,
            grid=(m_pad // tm,),
            in_specs=[pl.BlockSpec((tm, k_in), lambda i: (i, 0))] + wb_specs,
            out_specs=pl.BlockSpec((tm, n_out), lambda i: (i, 0)),
        ),
        compiler_params=pltpu.CompilerParams(
            dimension_semantics=("parallel",),
            vmem_limit_bytes=vmem_limit,
        ),
    )(h, *flat_inputs)


def _pick_tm(B, vmem_cap):
    if B <= 16:
        return _round_up(max(B, 1), _SUBLANE)
    # v5e/v6e (128 MiB VMEM) afford bigger row tiles (amortize ~0.35 us/step
    # grid overhead, better DMA efficiency); keep 256 on v7x (64 MiB).
    tm_max = 512 if vmem_cap >= (96 << 20) else 256
    # >= 2 grid steps so both v7x TensorCores get work via the parallel axis.
    return max(_SUBLANE, min(tm_max, _round_up(pl.cdiv(B, 2), _SUBLANE)))


def _group_layers(params, weight_budget_bytes):
    """Greedily pack consecutive layers whose resident bytes fit the budget."""
    groups, cur, cur_bytes = [], [], 0
    for w, b in params:
        nbytes = w.size * w.dtype.itemsize + b.size * b.dtype.itemsize
        if cur and cur_bytes + nbytes > weight_budget_bytes:
            groups.append(cur)
            cur, cur_bytes = [], 0
        cur.append((w, b))
        cur_bytes += nbytes
    if cur:
        groups.append(cur)
    # TODO(synk): if a SINGLE layer exceeds the budget, a K-tiled reduction
    # grid axis (+ f32 accumulator scratch) would be needed; not required for
    # the configs handled here.
    return groups


def mlp_forward(x, params):
    """Pallas implementation of MLP.forward (inference mode)."""
    B, C, H, W = x.shape
    k0 = C * H * W
    n_out = params[-1][0].shape[1]
    num_layers = len(params)

    vmem_cap = _vmem_capacity_bytes()

    # ---- pad K0 and every layer width to a multiple of 128 (lane-dense
    # stores, full MXU tiles); zero padding is exact through linear + ReLU.
    sizes = [k0] + [w.shape[1] for w, _ in params]
    sizes_pad = [_round_up(s, 128) for s in sizes]
    prepped = []
    for i, (w, b) in enumerate(params):
        kp, np_ = sizes_pad[i], sizes_pad[i + 1]
        if (kp, np_) != w.shape:
            w = jnp.pad(w, ((0, kp - w.shape[0]), (0, np_ - w.shape[1])))
        if np_ != b.shape[0]:
            b = jnp.pad(b, (0, np_ - b.shape[0]))
        # bf16 weights: halve HBM weight traffic + resident VMEM, native MXU
        # dtype on all generations; biases stay f32 (negligible bytes).
        prepped.append((w.astype(jnp.bfloat16), b.astype(jnp.float32)))

    # ---- generation-aware fit check (v7x has half the VMEM of v5e/v6e):
    # split the layer stack into VMEM-resident groups if needed.
    groups = _group_layers(prepped, weight_budget_bytes=vmem_cap // 2)

    # ---- choose the batch row-tile; shrink if streaming tiles + temporaries
    # + resident weights would not leave VMEM headroom.
    tm = _pick_tm(B, vmem_cap)
    max_width = max(sizes_pad)
    max_group_resident = max(
        sum(w.size * w.dtype.itemsize + b.size * b.dtype.itemsize
            for w, b in g)
        for g in groups)
    while tm > _SUBLANE and (
            max_group_resident + tm * max_width * 18 > vmem_cap * 3 // 4):
        tm = max(_SUBLANE, _round_up(tm // 2, _SUBLANE))

    # ---- prep the activation matrix.
    h = x.reshape(B, k0)
    if sizes_pad[0] != k0:
        h = jnp.pad(h, ((0, 0), (0, sizes_pad[0] - k0)))
    h = h.astype(jnp.bfloat16)            # halve input DMA; accumulate is f32

    m_pad = _round_up(B, tm)
    if m_pad != B:
        # TODO(synk): for large non-tile-multiple B, mask the last-tile store
        # in-kernel instead of this host-side pad copy.
        h = jnp.pad(h, ((0, m_pad - B), (0, 0)))

    # ---- run the (possibly split) fused stack.
    layer_idx = 0
    for g, group in enumerate(groups):
        relu_flags = []
        for _ in group:
            relu_flags.append(layer_idx < num_layers - 1)
            layer_idx += 1
        last = g == len(groups) - 1
        out_dtype = x.dtype if last else jnp.bfloat16
        h = _run_stack(h, group, relu_flags, out_dtype, tm, vmem_cap)

    return h[:B, :n_out].reshape(B, -1, H, W)


def init_mlp_params(key, structure, dim):
    """Deterministic init matching nn.Linear(structure[i]*W*H, structure[i+1]*W*H)."""
    hw = dim[0] * dim[1]
    sizes = [c * hw for c in structure]
    params = []
    for i in range(len(sizes) - 1):
        key, kw, kb = jax.random.split(key, 3)
        bound = 1.0 / (sizes[i] ** 0.5)
        w = jax.random.uniform(
            kw, (sizes[i], sizes[i + 1]), jnp.float32, -bound, bound)
        b = jax.random.uniform(kb, (sizes[i + 1],), jnp.float32, -bound, bound)
        params.append((w, b))
    return params


if __name__ == "__main__":
    # config equivalent:
    #   structures: in_channels=4, hidden_channels=[2], out_channels=2
    #   dimension: [16, 16], activation_func: 'relu', dropouts: 0
    structure = [4, 2, 2]
    dim = [16, 16]
    B = 2

    key = jax.random.PRNGKey(0)
    kx, kp = jax.random.split(key)
    x = jax.random.normal(kx, (B, structure[0], dim[0], dim[1]), jnp.float32)
    params = init_mlp_params(kp, structure, dim)

    out = jax.block_until_ready(mlp_forward(x, params))

    # sanity check against plain-JAX f32 reference (eval-mode forward);
    # tolerance loosened for the bf16 weight/activation path.
    h = x.reshape(B, -1)
    for w, b in params[:-1]:
        h = jnp.maximum(
            jnp.dot(h, w, precision=jax.lax.Precision.HIGHEST) + b, 0.0)
    ref = (jnp.dot(h, params[-1][0], precision=jax.lax.Precision.HIGHEST)
           + params[-1][1]).reshape(B, -1, dim[0], dim[1])

    assert out.shape == (B, structure[-1], dim[0], dim[1])
    assert out.dtype == x.dtype
    assert jnp.allclose(out, ref, atol=3e-2, rtol=3e-2), float(
        jnp.max(jnp.abs(out - ref)))

    print("KERNEL_OK")
</pallas_src>

<mosaic_0001>
module attributes {stable_mosaic.version = 11 : i64} {
  func.func @_fused_stack_kernel(%arg0: i32, %arg1: memref<16x1024xbf16, #tpu.memory_space<vmem>>, %arg2: memref<1024x512xbf16, #tpu.memory_space<vmem>>, %arg3: memref<1x512xf32, #tpu.memory_space<vmem>>, %arg4: memref<512x512xbf16, #tpu.memory_space<vmem>>, %arg5: memref<1x512xf32, #tpu.memory_space<vmem>>, %arg6: memref<16x512xf32, #tpu.memory_space<vmem>>) attributes {dimension_semantics = [#tpu.dimension_semantics<parallel>], iteration_bounds = array<i64: 1>, scalar_prefetch = 0 : i64, scratch_operands = 0 : i64, tpu.core_type = #tpu.core_type<tc>, window_params = [{transform_indices = @transform_0, window_bounds = array<i64: 16, 1024>}, {pipeline_mode = #tpu.pipeline_mode<synchronous>, transform_indices = @transform_1, window_bounds = array<i64: 1024, 512>}, {pipeline_mode = #tpu.pipeline_mode<synchronous>, transform_indices = @transform_2, window_bounds = array<i64: 1, 512>}, {pipeline_mode = #tpu.pipeline_mode<synchronous>, transform_indices = @transform_3, window_bounds = array<i64: 512, 512>}, {pipeline_mode = #tpu.pipeline_mode<synchronous>, transform_indices = @transform_4, window_bounds = array<i64: 1, 512>}, {transform_indices = @transform_5, window_bounds = array<i64: 16, 512>}]} {
    %c0 = arith.constant 0 : index
    %c0_0 = arith.constant 0 : index
    %0 = vector.load %arg1[%c0, %c0_0] : memref<16x1024xbf16, #tpu.memory_space<vmem>>, vector<16x1024xbf16>
    %c0_1 = arith.constant 0 : index
    %c0_2 = arith.constant 0 : index
    %1 = vector.load %arg2[%c0_1, %c0_2] : memref<1024x512xbf16, #tpu.memory_space<vmem>>, vector<1024x512xbf16>
    %c0_3 = arith.constant 0 : index
    %c0_4 = arith.constant 0 : index
    %2 = vector.load %arg3[%c0_3, %c0_4] : memref<1x512xf32, #tpu.memory_space<vmem>>, vector<1x512xf32>
    %cst = arith.constant dense<0.000000e+00> : vector<16x512xf32>
    %3 = tpu.matmul %0, %1, %cst {dimension_numbers = #tpu.dot_dimension_numbers<[1], [0], [0], [1], [0, 0, 1, 1], [], []>} : vector<16x1024xbf16>, vector<1024x512xbf16>, vector<16x512xf32> -> vector<16x512xf32>
    %4 = vector.broadcast %2 : vector<1x512xf32> to vector<16x512xf32>
    %5 = arith.addf %3, %4 : vector<16x512xf32>
    %cst_5 = arith.constant 0.000000e+00 : f32
    %6 = vector.broadcast %cst_5 : f32 to vector<16x512xf32>
    %7 = arith.maximumf %5, %6 : vector<16x512xf32>
    %8 = arith.truncf %7 : vector<16x512xf32> to vector<16x512xbf16>
    %c0_6 = arith.constant 0 : index
    %c0_7 = arith.constant 0 : index
    %9 = vector.load %arg4[%c0_6, %c0_7] : memref<512x512xbf16, #tpu.memory_space<vmem>>, vector<512x512xbf16>
    %c0_8 = arith.constant 0 : index
    %c0_9 = arith.constant 0 : index
    %10 = vector.load %arg5[%c0_8, %c0_9] : memref<1x512xf32, #tpu.memory_space<vmem>>, vector<1x512xf32>
    %cst_10 = arith.constant dense<0.000000e+00> : vector<16x512xf32>
    %11 = tpu.matmul %8, %9, %cst_10 {dimension_numbers = #tpu.dot_dimension_numbers<[1], [0], [0], [1], [0, 0, 1, 1], [], []>} : vector<16x512xbf16>, vector<512x512xbf16>, vector<16x512xf32> -> vector<16x512xf32>
    %12 = vector.broadcast %10 : vector<1x512xf32> to vector<16x512xf32>
    %13 = arith.addf %11, %12 : vector<16x512xf32>
    %c0_11 = arith.constant 0 : index
    %c0_12 = arith.constant 0 : index
    %14 = vector.load %arg6[%c0_11, %c0_12] : memref<16x512xf32, #tpu.memory_space<vmem>>, vector<16x512xf32>
    tpu.vector_store %arg6[%c0_11, %c0_12], %13 {strides = array<i32>} : memref<16x512xf32, #tpu.memory_space<vmem>>, vector<16x512xf32>,
    return
  }
  func.func @transform_0(%arg0: i32) -> (i32, i32) {
    %c0_i32 = arith.constant 0 : i32
    %c0_i32_0 = arith.constant 0 : i32
    return %arg0, %c0_i32 : i32, i32
  }
  func.func @transform_1(%arg0: i32) -> (i32, i32) {
    %c0_i32 = arith.constant 0 : i32
    %c0_i32_0 = arith.constant 0 : i32
    %c0_i32_1 = arith.constant 0 : i32
    return %c0_i32, %c0_i32_0 : i32, i32
  }
  func.func @transform_2(%arg0: i32) -> (i32, i32) {
    %c0_i32 = arith.constant 0 : i32
    %c0_i32_0 = arith.constant 0 : i32
    %c0_i32_1 = arith.constant 0 : i32
    return %c0_i32, %c0_i32_0 : i32, i32
  }
  func.func @transform_3(%arg0: i32) -> (i32, i32) {
    %c0_i32 = arith.constant 0 : i32
    %c0_i32_0 = arith.constant 0 : i32
    %c0_i32_1 = arith.constant 0 : i32
    return %c0_i32, %c0_i32_0 : i32, i32
  }
  func.func @transform_4(%arg0: i32) -> (i32, i32) {
    %c0_i32 = arith.constant 0 : i32
    %c0_i32_0 = arith.constant 0 : i32
    %c0_i32_1 = arith.constant 0 : i32
    return %c0_i32, %c0_i32_0 : i32, i32
  }
  func.func @transform_5(%arg0: i32) -> (i32, i32) {
    %c0_i32 = arith.constant 0 : i32
    %c0_i32_0 = arith.constant 0 : i32
    return %arg0, %c0_i32 : i32, i32
  }
}

</mosaic_0001>

<bundles_post_ra>
// kernel: tpu_custom_call.1
= control target key start
LH: loop header
LB: loop body
LE: loop exit
PB: predicated region body
PF: predicated region fallthrough
CT: control target
= control target key end

     0   :  { %10 = vsyncpa [#allocation3], 0  ;;  %s5498_s0 = inlined_call_operand.hbm [shape: bf16[16,1024], index: 0, kind: input, shape index: {}]   ;;  %s5499_s1 = inlined_call_operand.hbm [shape: bf16[1024,512], index: 1, kind: input, shape index: {}]   ;;  %s5500_s2 = inlined_call_operand.hbm [shape: f32[1,512], index: 2, kind: input, shape index: {}]   ;;  %s5501_s3 = inlined_call_operand.hbm [shape: bf16[512,512], index: 3, kind: input, shape index: {}]   ;;  %s5502_s4 = inlined_call_operand.hbm [shape: f32[1,512], index: 4, kind: input, shape index: {}]   ;;  %s5503_s5 = inlined_call_operand.hbm [shape: f32[16,512], index: 5, kind: output, shape index: {}]  }
   0x1   :  { %11 = vsyncpa [#allocation6], 0 }
   0x2   :  { %12 = vsyncpa [#allocation9], 0  ;;  %s31_s20 = sshll.u32 %s5499_s1, 4  ;;  %s32_s20 = int_to_ptr.hbm [resolvable:$true] %s31_s20 }
   0x3   :  { %13 = vsyncpa [#allocation4], 0  ;;  %s5303_s21 = smov [#allocation5]   ;;  %s55_s25 = sshll.u32 %s5501_s3, 4  ;;  %s56_s25 = int_to_ptr.hbm [resolvable:$true] %s55_s25 }
   0x4   :  { %s33_s22 = sshll.u32 %s5303_s21, 4  ;;  %s5304_s26 = smov 256   ;;  %s34_s22 = int_to_ptr.vmem [resolvable:$true] %s33_s22 }
   0x5   :  { %s5305_s27 = smov 16   ;;  %s5306_s28 = smov [#allocation8]  }
   0x6   :  { %39 = dma.hbm_to_vmem [thread:$0]  %s32_s20, 32768, %s34_s22, [#allocation6], %s5304_s26, %s5304_s26, %s5305_s27  }
   0x7   :  { %s57_s29 = sshll.u32 %s5306_s28, 4  ;;  %s18_s7 = sshll.u32 %s5498_s0, 4  ;;  %s58_s29 = int_to_ptr.vmem [resolvable:$true] %s57_s29  ;;  %s19_s7 = int_to_ptr.hbm [resolvable:$true] %s18_s7 }
   0x8   :  { %63 = dma.hbm_to_vmem [thread:$0]  %s56_s25, 16384, %s58_s29, [#allocation9], %s5304_s26, %s5304_s26, %s5305_s27  }
   0x9   :  { %s5307_s1 = smov [#allocation2]   ;;  %s45_s3 = sshll.u32 %s5500_s2, 4  ;;  %s46_s3 = int_to_ptr.hbm [resolvable:$true] %s45_s3 }
   0xa   :  { %s20_s8 = sshll.u32 %s5307_s1, 4  ;;  %s5308_s11 = smov 512   ;;  %s21_s8 = int_to_ptr.vmem [resolvable:$true] %s20_s8 }
   0xb   :  { %s5309_s12 = smov 32   ;;  %s5310_s13 = smov [#allocation7]  }
   0xc   :  { %26 = dma.hbm_to_vmem [thread:$0]  %s19_s7, 1024, %s21_s8, [#allocation3], %s5308_s11, %s5308_s11, %s5309_s12  }
   0xd   :  { %s47_s14 = sshll.u32 %s5310_s13, 4  ;;  %s69_s16 = sshll.u32 %s5502_s4, 4  ;;  %s48_s14 = int_to_ptr.vmem [resolvable:$true] %s47_s14  ;;  %s70_s16 = int_to_ptr.hbm [resolvable:$true] %s69_s16 }
   0xe   :  { %50 = dma.hbm_to_vmem [thread:$0]  %s46_s3, 64, %s48_s14, [#allocation6]  }
   0xf   :  { %s5311_s17 = smov [#allocation10]  }
  0x10   :  { %s71_s18 = sshll.u32 %s5311_s17, 4  ;;  %s72_s18 = int_to_ptr.vmem [resolvable:$true] %s71_s18 }
  0x11   :  { %74 = dma.hbm_to_vmem [thread:$0]  %s70_s16, 64, %s72_s18, [#allocation9]  }
  0x12   :  { %5295 = dma.done.wait [#allocation3], 1024  }
  0x13   :  { %5296 = vsyncadd [#allocation3], 4294966272 }
  0x14   :  { %5297 = dma.done.wait [#allocation6], 32832  }
  0x15   :  { %5298 = vsyncadd [#allocation6], 4294934464 }
  0x16   :  { %5299 = dma.done.wait [#allocation9], 16448  }
  0x17   :  { %5300 = vsyncadd [#allocation9], 4294950848  ;;  %v3326_v0 = vld [vmem:[#allocation5 + $0xe0] sm:$0xf]  ;;  %v4786_v1 = vld [vmem:[#allocation5 + $0xec] sm:$0xf0] }
  0x18   :  { %v3454_v2 = vld [vmem:[#allocation5 + $0x1e0] sm:$0xf]  ;;  %v3327_v3 = vor.u32 %v4786_v1, %v3326_v0  ;;  %v4818_v4 = vld [vmem:[#allocation5 + $0x1ec] sm:$0xf0]  ;;  %s5312_s2 = smov [#allocation11]   ;;  %s3165_s21 = sshll.u32 %s5503_s5, 4  ;;  %s3166_s21 = int_to_ptr.hbm [resolvable:$true] %s3165_s21 }
  0x19   :  { %v3582_v5 = vld [vmem:[#allocation5 + $0x2e0] sm:$0xf]  ;;  %v4850_v6 = vld [vmem:[#allocation5 + $0x2ec] sm:$0xf0]  ;;  %v3455_v7 = vor.u32 %v4818_v4, %v3454_v2  ;;  %s3163_s4 = sshll.u32 %s5312_s2, 4  ;;  %s3164_s4 = int_to_ptr.vmem [resolvable:$true] %s3163_s4 }
  0x1a   :  { %v3583_v8 = vor.u32 %v4850_v6, %v3582_v5  ;;  %v3710_v9 = vld [vmem:[#allocation5 + $0x3e0] sm:$0xf]  ;;  %v4882_v10 = vld [vmem:[#allocation5 + $0x3ec] sm:$0xf0]  ;;  %1689 = vmatpush.bf16.msra.mxu0 %v3327_v3 }
  0x1b   :  { %v3310_v11 = vld [vmem:[#allocation5 + $0xc0] sm:$0xf]  ;;  %v3711_v12 = vor.u32 %v4882_v10, %v3710_v9  ;;  %v4782_v13 = vld [vmem:[#allocation5 + $0xcc] sm:$0xf0]  ;;  %1703 = vmatpush.bf16.msra.mxu1 %v3455_v7 }
  0x1c   :  { %v3438_v14 = vld [vmem:[#allocation5 + $0x1c0] sm:$0xf]  ;;  %v4814_v15 = vld [vmem:[#allocation5 + $0x1cc] sm:$0xf0]  ;;  %1717 = vmatpush.bf16.msra.mxu2 %v3583_v8  ;;  %v3311_v16 = vor.u32 %v4782_v13, %v3310_v11 }
  0x1d   :  { %v3439_v17 = vor.u32 %v4814_v15, %v3438_v14  ;;  %v3566_v18 = vld [vmem:[#allocation5 + $0x2c0] sm:$0xf]  ;;  %v4846_v19 = vld [vmem:[#allocation5 + $0x2cc] sm:$0xf0]  ;;  %1731 = vmatpush.bf16.msra.mxu3 %v3711_v12 }
  0x1e   :  { %v3694_v20 = vld [vmem:[#allocation5 + $0x3c0] sm:$0xf]  ;;  %v3567_v21 = vor.u32 %v4846_v19, %v3566_v18  ;;  %v4878_v22 = vld [vmem:[#allocation5 + $0x3cc] sm:$0xf0]  ;;  %1690 = vmatpush.bf16.msra.mxu0 %v3311_v16 }
  0x1f   :  { %v3294_v23 = vld [vmem:[#allocation5 + $0xa0] sm:$0xf]  ;;  %v4778_v24 = vld [vmem:[#allocation5 + $0xac] sm:$0xf0]  ;;  %v3695_v25 = vor.u32 %v4878_v22, %v3694_v20  ;;  %1704 = vmatpush.bf16.msra.mxu1 %v3439_v17 }
  0x20   :  { %v3422_v26 = vld [vmem:[#allocation5 + $0x1a0] sm:$0xf]  ;;  %v4810_v27 = vld [vmem:[#allocation5 + $0x1ac] sm:$0xf0]  ;;  %v3295_v29 = vor.u32 %v4778_v24, %v3294_v23  ;;  %1718 = vmatpush.bf16.msra.mxu2 %v3567_v21 }
  0x21   :  { %v3550_v28 = vld [vmem:[#allocation5 + $0x2a0] sm:$0xf]  ;;  %v4842_v30 = vld [vmem:[#allocation5 + $0x2ac] sm:$0xf0]  ;;  %v3423_v33 = vor.u32 %v4810_v27, %v3422_v26  ;;  %1732 = vmatpush.bf16.msra.mxu3 %v3695_v25 }
  0x22   :  { %v3678_v31 = vld [vmem:[#allocation5 + $0x3a0] sm:$0xf]  ;;  %v4874_v32 = vld [vmem:[#allocation5 + $0x3ac] sm:$0xf0]  ;;  %v3551_v34 = vor.u32 %v4842_v30, %v3550_v28  ;;  %1691 = vmatpush.bf16.msra.mxu0 %v3295_v29 }
  0x23   :  { %v3278_v35 = vld [vmem:[#allocation5 + $0x80] sm:$0xf]  ;;  %v4774_v36 = vld [vmem:[#allocation5 + $0x8c] sm:$0xf0]  ;;  %v3679_v38 = vor.u32 %v4874_v32, %v3678_v31  ;;  %1705 = vmatpush.bf16.msra.mxu1 %v3423_v33 }
  0x24   :  { %v3406_v37 = vld [vmem:[#allocation5 + $0x180] sm:$0xf]  ;;  %v4806_v39 = vld [vmem:[#allocation5 + $0x18c] sm:$0xf0]  ;;  %v3279_v44 = vor.u32 %v4774_v36, %v3278_v35  ;;  %1719 = vmatpush.bf16.msra.mxu2 %v3551_v34 }
  0x25   :  { %v3534_v40 = vld [vmem:[#allocation5 + $0x280] sm:$0xf]  ;;  %v4838_v41 = vld [vmem:[#allocation5 + $0x28c] sm:$0xf0]  ;;  %v3407_v45 = vor.u32 %v4806_v39, %v3406_v37  ;;  %1733 = vmatpush.bf16.msra.mxu3 %v3679_v38 }
  0x26   :  { %v3662_v42 = vld [vmem:[#allocation5 + $0x380] sm:$0xf]  ;;  %v4870_v43 = vld [vmem:[#allocation5 + $0x38c] sm:$0xf0]  ;;  %v3535_v46 = vor.u32 %v4838_v41, %v3534_v40  ;;  %1692 = vmatpush.bf16.msra.mxu0 %v3279_v44 }
  0x27   :  { %v3262_v47 = vld [vmem:[#allocation5 + $0x60] sm:$0xf]  ;;  %v4770_v48 = vld [vmem:[#allocation5 + $0x6c] sm:$0xf0]  ;;  %v3663_v50 = vor.u32 %v4870_v43, %v3662_v42  ;;  %1706 = vmatpush.bf16.msra.mxu1 %v3407_v45 }
  0x28   :  { %v3390_v49 = vld [vmem:[#allocation5 + $0x160] sm:$0xf]  ;;  %v4802_v51 = vld [vmem:[#allocation5 + $0x16c] sm:$0xf0]  ;;  %v3263_v56 = vor.u32 %v4770_v48, %v3262_v47  ;;  %1720 = vmatpush.bf16.msra.mxu2 %v3535_v46 }
  0x29   :  { %v3518_v52 = vld [vmem:[#allocation5 + $0x260] sm:$0xf]  ;;  %v4834_v53 = vld [vmem:[#allocation5 + $0x26c] sm:$0xf0]  ;;  %v3391_v57 = vor.u32 %v4802_v51, %v3390_v49  ;;  %1734 = vmatpush.bf16.msra.mxu3 %v3663_v50 }
  0x2a   :  { %v3646_v54 = vld [vmem:[#allocation5 + $0x360] sm:$0xf]  ;;  %v4866_v55 = vld [vmem:[#allocation5 + $0x36c] sm:$0xf0]  ;;  %v3519_v58 = vor.u32 %v4834_v53, %v3518_v52  ;;  %1693 = vmatpush.bf16.msra.mxu0 %v3263_v56 }
  0x2b   :  { %v3246_v59 = vld [vmem:[#allocation5 + $0x40] sm:$0xf]  ;;  %v4766_v60 = vld [vmem:[#allocation5 + $0x4c] sm:$0xf0]  ;;  %v3647_v62 = vor.u32 %v4866_v55, %v3646_v54  ;;  %1707 = vmatpush.bf16.msra.mxu1 %v3391_v57  ;;  %v3190_v54 = vld [vmem:[#allocation2 + $0x8] sm:$0xf] }
  0x2c   :  { %v3374_v61 = vld [vmem:[#allocation5 + $0x140] sm:$0xf]  ;;  %v4798_v63 = vld [vmem:[#allocation5 + $0x14c] sm:$0xf0]  ;;  %v3247_v4 = vor.u32 %v4766_v60, %v3246_v59  ;;  %1721 = vmatpush.bf16.msra.mxu2 %v3519_v58  ;;  %v4753_v59 = vld [vmem:[#allocation2 + $0x24] sm:$0xf0] }
  0x2d   :  { %v3502_v0 = vld [vmem:[#allocation5 + $0x240] sm:$0xf]  ;;  %v4830_v1 = vld [vmem:[#allocation5 + $0x24c] sm:$0xf0]  ;;  %v3375_v5 = vor.u32 %v4798_v63, %v3374_v61  ;;  %1735 = vmatpush.bf16.msra.mxu3 %v3647_v62 }
  0x2e   :  { %v3630_v2 = vld [vmem:[#allocation5 + $0x340] sm:$0xf]  ;;  %v4862_v3 = vld [vmem:[#allocation5 + $0x34c] sm:$0xf0]  ;;  %v3503_v6 = vor.u32 %v4830_v1, %v3502_v0  ;;  %1694 = vmatpush.bf16.msra.mxu0 %v3247_v4  ;;  %v5363_v1 = vor.u32 %v4753_v59, %v3190_v54 }
  0x2f   :  { %v3230_v7 = vld [vmem:[#allocation5 + $0x20] sm:$0xf]  ;;  %v4762_v8 = vld [vmem:[#allocation5 + $0x2c] sm:$0xf0]  ;;  %v3631_v10 = vor.u32 %v4862_v3, %v3630_v2  ;;  %1708 = vmatpush.bf16.msra.mxu1 %v3375_v5 }
  0x30   :  { %v3358_v9 = vld [vmem:[#allocation5 + $0x120] sm:$0xf]  ;;  %v4794_v11 = vld [vmem:[#allocation5 + $0x12c] sm:$0xf0]  ;;  %v3231_v16 = vor.u32 %v4762_v8, %v3230_v7  ;;  %1722 = vmatpush.bf16.msra.mxu2 %v3503_v6  ;;  %v4748_v6 = vld [vmem:[#allocation2 + $0x4] sm:$0xf] }
  0x31   :  { %v3486_v12 = vld [vmem:[#allocation5 + $0x220] sm:$0xf]  ;;  %v4826_v13 = vld [vmem:[#allocation5 + $0x22c] sm:$0xf0]  ;;  %v3359_v19 = vor.u32 %v4794_v11, %v3358_v9  ;;  %1736 = vmatpush.bf16.msra.mxu3 %v3631_v10  ;;  %v3184_v7 = vld [vmem:[#allocation2 + $0x20] sm:$0xf0] }
  0x32   :  { %v3614_v14 = vld [vmem:[#allocation5 + $0x320] sm:$0xf]  ;;  %v4858_v15 = vld [vmem:[#allocation5 + $0x32c] sm:$0xf0]  ;;  %v3487_v20 = vor.u32 %v4826_v13, %v3486_v12  ;;  %1695 = vmatpush.bf16.msra.mxu0 %v3231_v16  ;;  %v4749_v8 = vld [vmem:[#allocation2 + $0xc] sm:$0xf]  ;;  %v5367_v10 = vor.u32 %v4748_v6, %v3184_v7 }
  0x33   :  { %v3214_v17 = vld [vmem:[#allocation5] sm:$0xf]  ;;  %v4758_v18 = vld [vmem:[#allocation5 + $0xc] sm:$0xf0]  ;;  %v3615_v24 = vor.u32 %v4858_v15, %v3614_v14  ;;  %1709 = vmatpush.bf16.msra.mxu1 %v3359_v19  ;;  %v3192_v11 = vld [vmem:[#allocation2 + $0x28] sm:$0xf0] }
  0x34   :  { %v3342_v21 = vld [vmem:[#allocation5 + $0x100] sm:$0xf]  ;;  %v4790_v22 = vld [vmem:[#allocation5 + $0x10c] sm:$0xf0]  ;;  %v3215_v31 = vor.u32 %v4758_v18, %v3214_v17  ;;  %1723 = vmatpush.bf16.msra.mxu2 %v3487_v20  ;;  %v5369_v17 = vor.u32 %v4749_v8, %v3192_v11 }
  0x35   :  { %v3470_v23 = vld [vmem:[#allocation5 + $0x200] sm:$0xf]  ;;  %v4822_v25 = vld [vmem:[#allocation5 + $0x20c] sm:$0xf0]  ;;  %v3343_v35 = vor.u32 %v4790_v22, %v3342_v21  ;;  %1737 = vmatpush.bf16.msra.mxu3 %v3615_v24 }
  0x36   :  { %v3598_v26 = vld [vmem:[#allocation5 + $0x300] sm:$0xf]  ;;  %v4854_v27 = vld [vmem:[#allocation5 + $0x30c] sm:$0xf0]  ;;  %v3471_v36 = vor.u32 %v4822_v25, %v3470_v23  ;;  %1696 = vmatpush.bf16.msra.mxu0 %v3215_v31 }
  0x37   :  { %v3838_v28 = vld [vmem:[#allocation5 + $0x4e0] sm:$0xf]  ;;  %v4914_v29 = vld [vmem:[#allocation5 + $0x4ec] sm:$0xf0]  ;;  %v3599_v39 = vor.u32 %v4854_v27, %v3598_v26  ;;  %1710 = vmatpush.bf16.msra.mxu1 %v3343_v35 }
  0x38   :  { %v3966_v30 = vld [vmem:[#allocation5 + $0x5e0] sm:$0xf]  ;;  %v4946_v32 = vld [vmem:[#allocation5 + $0x5ec] sm:$0xf0]  ;;  %v3839_v40 = vor.u32 %v4914_v29, %v3838_v28  ;;  %1724 = vmatpush.bf16.msra.mxu2 %v3471_v36 }
  0x39   :  { %v4094_v33 = vld [vmem:[#allocation5 + $0x6e0] sm:$0xf]  ;;  %v4978_v34 = vld [vmem:[#allocation5 + $0x6ec] sm:$0xf0]  ;;  %v3967_v43 = vor.u32 %v4946_v32, %v3966_v30  ;;  %1738 = vmatpush.bf16.msra.mxu3 %v3599_v39 }
  0x3a   :  { %v4222_v37 = vld [vmem:[#allocation5 + $0x7e0] sm:$0xf]  ;;  %v5010_v38 = vld [vmem:[#allocation5 + $0x7ec] sm:$0xf0]  ;;  %v4095_v44 = vor.u32 %v4978_v34, %v4094_v33  ;;  %1745 = vmatpush.bf16.msrb.mxu0 %v3839_v40  ;;  %1711 = vmatmul.bf16.vlgmr.msra.gmra.mxu1 %v5367_v10 }
  0x3b   :  { %v3822_v41 = vld [vmem:[#allocation5 + $0x4c0] sm:$0xf]  ;;  %v4910_v42 = vld [vmem:[#allocation5 + $0x4cc] sm:$0xf0]  ;;  %v4223_v48 = vor.u32 %v5010_v38, %v4222_v37  ;;  %1759 = vmatpush.bf16.msrb.mxu1 %v3967_v43  ;;  %1725 = vmatmul.bf16.vlgmr.msra.gmra.mxu2 %v5363_v1 }
  0x3c   :  { %v3950_v45 = vld [vmem:[#allocation5 + $0x5c0] sm:$0xf]  ;;  %v4942_v46 = vld [vmem:[#allocation5 + $0x5cc] sm:$0xf0]  ;;  %v3823_v55 = vor.u32 %v4910_v42, %v3822_v41  ;;  %1773 = vmatpush.bf16.msrb.mxu2 %v4095_v44  ;;  %1739 = vmatmul.bf16.vlgmr.msra.gmra.mxu3 %v5369_v17 }
  0x3d   :  { %v4078_v47 = vld [vmem:[#allocation5 + $0x6c0] sm:$0xf]  ;;  %v4974_v49 = vld [vmem:[#allocation5 + $0x6cc] sm:$0xf0]  ;;  %v3951_v60 = vor.u32 %v4942_v46, %v3950_v45  ;;  %1787 = vmatpush.bf16.msrb.mxu3 %v4223_v48 }
  0x3e   :  { %v4206_v50 = vld [vmem:[#allocation5 + $0x7c0] sm:$0xf]  ;;  %v5006_v51 = vld [vmem:[#allocation5 + $0x7cc] sm:$0xf0]  ;;  %v4079_v61 = vor.u32 %v4974_v49, %v4078_v47  ;;  %1746 = vmatpush.bf16.msrb.mxu0 %v3823_v55 }
  0x3f   :  { %v3182_v52 = vld [vmem:[#allocation2] sm:$0xf]  ;;  %v4906_v57 = vld [vmem:[#allocation5 + $0x4ac] sm:$0xf0]  ;;  %v4207_v2 = vor.u32 %v5006_v51, %v4206_v50  ;;  %1760 = vmatpush.bf16.msrb.mxu1 %v3951_v60 }
  0x40   :  { %v4752_v53 = vld [vmem:[#allocation2 + $0x1c] sm:$0xf0]  ;;  %v4938_v63 = vld [vmem:[#allocation5 + $0x5ac] sm:$0xf0]  ;;  %1774 = vmatpush.bf16.msrb.mxu2 %v4079_v61 }
  0x41   :  { %v3806_v56 = vld [vmem:[#allocation5 + $0x4a0] sm:$0xf]  ;;  %v5361_v58 = vor.u32 %v4752_v53, %v3182_v52  ;;  %v4970_v3 = vld [vmem:[#allocation5 + $0x6ac] sm:$0xf0]  ;;  %1788 = vmatpush.bf16.msrb.mxu3 %v4207_v2 }
  0x42   :  { %v3934_v62 = vld [vmem:[#allocation5 + $0x5a0] sm:$0xf]  ;;  %v5002_v5 = vld [vmem:[#allocation5 + $0x7ac] sm:$0xf0]  ;;  %v3807_v9 = vor.u32 %v4906_v57, %v3806_v56 }
  0x43   :  { %v4062_v0 = vld [vmem:[#allocation5 + $0x6a0] sm:$0xf]  ;;  %1697 = vmatmul.bf16.vlgmr.msra.gmra.mxu0 %v5361_v58  ;;  %v3935_v12 = vor.u32 %v4938_v63, %v3934_v62  ;;  %v4902_v15 = vld [vmem:[#allocation5 + $0x48c] sm:$0xf0] }
  0x44   :  { %v4190_v4 = vld [vmem:[#allocation5 + $0x7a0] sm:$0xf]  ;;  %v4063_v13 = vor.u32 %v4970_v3, %v4062_v0  ;;  %v4934_v19 = vld [vmem:[#allocation5 + $0x58c] sm:$0xf0]  ;;  %1747 = vmatpush.bf16.msrb.mxu0 %v3807_v9  ;;  %v4784_v9 = vld [vmem:[#allocation5 + $0xe4] sm:$0xf] }
  0x45   :  { %v3790_v14 = vld [vmem:[#allocation5 + $0x480] sm:$0xf]  ;;  %v4191_v18 = vor.u32 %v5002_v5, %v4190_v4  ;;  %v4966_v21 = vld [vmem:[#allocation5 + $0x68c] sm:$0xf0]  ;;  %1761 = vmatpush.bf16.msrb.mxu1 %v3935_v12  ;;  %v3328_v12 = vld [vmem:[#allocation5 + $0xf0] sm:$0xf0] }
  0x46   :  { %v3918_v16 = vld [vmem:[#allocation5 + $0x580] sm:$0xf]  ;;  %v4998_v23 = vld [vmem:[#allocation5 + $0x78c] sm:$0xf0]  ;;  %v3791_v24 = vor.u32 %v4902_v15, %v3790_v14  ;;  %1775 = vmatpush.bf16.msrb.mxu2 %v4063_v13  ;;  %v4816_v13 = vld [vmem:[#allocation5 + $0x1e4] sm:$0xf] }
  0x47   :  { %v4046_v20 = vld [vmem:[#allocation5 + $0x680] sm:$0xf]  ;;  %v3919_v25 = vor.u32 %v4934_v19, %v3918_v16  ;;  %v4898_v28 = vld [vmem:[#allocation5 + $0x46c] sm:$0xf0]  ;;  %1789 = vmatpush.bf16.msrb.mxu3 %v4191_v18  ;;  %v3456_v14 = vld [vmem:[#allocation5 + $0x1f0] sm:$0xf0] }
  0x48   :  { %v4174_v22 = vld [vmem:[#allocation5 + $0x780] sm:$0xf]  ;;  %v4047_v26 = vor.u32 %v4966_v21, %v4046_v20  ;;  %v4930_v31 = vld [vmem:[#allocation5 + $0x56c] sm:$0xf0]  ;;  %1748 = vmatpush.bf16.msrb.mxu0 %v3791_v24  ;;  %v4848_v15 = vld [vmem:[#allocation5 + $0x2e4] sm:$0xf] }
  0x49   :  { %v3774_v27 = vld [vmem:[#allocation5 + $0x460] sm:$0xf]  ;;  %v4175_v30 = vor.u32 %v4998_v23, %v4174_v22  ;;  %v4962_v33 = vld [vmem:[#allocation5 + $0x66c] sm:$0xf0]  ;;  %1762 = vmatpush.bf16.msrb.mxu1 %v3919_v25  ;;  %v3584_v16 = vld [vmem:[#allocation5 + $0x2f0] sm:$0xf0] }
  0x4a   :  { %v3902_v29 = vld [vmem:[#allocation5 + $0x560] sm:$0xf]  ;;  %v4994_v35 = vld [vmem:[#allocation5 + $0x76c] sm:$0xf0]  ;;  %v3775_v36 = vor.u32 %v4898_v28, %v3774_v27  ;;  %1776 = vmatpush.bf16.msrb.mxu2 %v4047_v26  ;;  %v4880_v18 = vld [vmem:[#allocation5 + $0x3e4] sm:$0xf] }
  0x4b   :  { %v4030_v32 = vld [vmem:[#allocation5 + $0x660] sm:$0xf]  ;;  %v3903_v37 = vor.u32 %v4930_v31, %v3902_v29  ;;  %v4894_v40 = vld [vmem:[#allocation5 + $0x44c] sm:$0xf0]  ;;  %1790 = vmatpush.bf16.msrb.mxu3 %v4175_v30  ;;  %v3712_v20 = vld [vmem:[#allocation5 + $0x3f0] sm:$0xf0]  ;;  %v3331_v29 = vor.u32 %v4784_v9, %v3328_v12 }
  0x4c   :  { %v4158_v34 = vld [vmem:[#allocation5 + $0x760] sm:$0xf]  ;;  %v4031_v38 = vor.u32 %v4962_v33, %v4030_v32  ;;  %v4926_v43 = vld [vmem:[#allocation5 + $0x54c] sm:$0xf0]  ;;  %1749 = vmatpush.bf16.msrb.mxu0 %v3775_v36  ;;  %v3206_v25 = vld [vmem:[#allocation2 + $0x18] sm:$0xf]  ;;  %v3459_v33 = vor.u32 %v4816_v13, %v3456_v14 }
  0x4d   :  { %v3758_v39 = vld [vmem:[#allocation5 + $0x440] sm:$0xf]  ;;  %v4159_v42 = vor.u32 %v4994_v35, %v4158_v34  ;;  %v4958_v45 = vld [vmem:[#allocation5 + $0x64c] sm:$0xf0]  ;;  %1763 = vmatpush.bf16.msrb.mxu1 %v3903_v37  ;;  %v4755_v26 = vld [vmem:[#allocation2 + $0x34] sm:$0xf0]  ;;  %v3587_v34 = vor.u32 %v4848_v15, %v3584_v16 }
  0x4e   :  { %v3886_v41 = vld [vmem:[#allocation5 + $0x540] sm:$0xf]  ;;  %v4990_v47 = vld [vmem:[#allocation5 + $0x74c] sm:$0xf0]  ;;  %v3759_v48 = vor.u32 %v4894_v40, %v3758_v39  ;;  %1777 = vmatpush.bf16.msrb.mxu2 %v4031_v38  ;;  %v4750_v27 = vld [vmem:[#allocation2 + $0x14] sm:$0xf]  ;;  %v3715_v38 = vor.u32 %v4880_v18, %v3712_v20 }
  0x4f   :  { %v4014_v44 = vld [vmem:[#allocation5 + $0x640] sm:$0xf]  ;;  %v3887_v50 = vor.u32 %v4926_v43, %v3886_v41  ;;  %v4890_v52 = vld [vmem:[#allocation5 + $0x42c] sm:$0xf0]  ;;  %1791 = vmatpush.bf16.msrb.mxu3 %v4159_v42  ;;  %v3200_v30 = vld [vmem:[#allocation2 + $0x30] sm:$0xf0]  ;;  %v5375_v43 = vor.u32 %v4755_v26, %v3206_v25 }
  0x50   :  { %v4142_v46 = vld [vmem:[#allocation5 + $0x740] sm:$0xf]  ;;  %v4015_v51 = vor.u32 %v4958_v45, %v4014_v44  ;;  %v4922_v54 = vld [vmem:[#allocation5 + $0x52c] sm:$0xf0]  ;;  %1750 = vmatpush.bf16.msrb.mxu0 %v3759_v48  ;;  %v4751_v31 = vld [vmem:[#allocation2 + $0x1c] sm:$0xf]  ;;  %v5377_v44 = vor.u32 %v4750_v27, %v3200_v30 }
  0x51   :  { %v3742_v49 = vld [vmem:[#allocation5 + $0x420] sm:$0xf]  ;;  %v4143_v55 = vor.u32 %v4990_v47, %v4142_v46  ;;  %v4954_v57 = vld [vmem:[#allocation5 + $0x62c] sm:$0xf0]  ;;  %1764 = vmatpush.bf16.msrb.mxu1 %v3887_v50  ;;  %v3208_v32 = vld [vmem:[#allocation2 + $0x38] sm:$0xf0] }
  0x52   :  { %v3870_v53 = vld [vmem:[#allocation5 + $0x520] sm:$0xf]  ;;  %v4986_v60 = vld [vmem:[#allocation5 + $0x72c] sm:$0xf0]  ;;  %v3743_v63 = vor.u32 %v4890_v52, %v3742_v49  ;;  %1778 = vmatpush.bf16.msrb.mxu2 %v4015_v51  ;;  %v4780_v35 = vld [vmem:[#allocation5 + $0xc4] sm:$0xf]  ;;  %v5379_v47 = vor.u32 %v4751_v31, %v3208_v32 }
  0x53   :  { %v3998_v56 = vld [vmem:[#allocation5 + $0x620] sm:$0xf]  ;;  %v4886_v62 = vld [vmem:[#allocation5 + $0x40c] sm:$0xf0]  ;;  %v3871_v5 = vor.u32 %v4922_v54, %v3870_v53  ;;  %1792 = vmatpush.bf16.msrb.mxu3 %v4143_v55  ;;  %v3312_v36 = vld [vmem:[#allocation5 + $0xd0] sm:$0xf0] }
  0x54   :  { %v4126_v59 = vld [vmem:[#allocation5 + $0x720] sm:$0xf]  ;;  %v4918_v2 = vld [vmem:[#allocation5 + $0x50c] sm:$0xf0]  ;;  %v3999_v6 = vor.u32 %v4954_v57, %v3998_v56  ;;  %1751 = vmatpush.bf16.msrb.mxu0 %v3743_v63  ;;  %v4812_v37 = vld [vmem:[#allocation5 + $0x1c4] sm:$0xf]  ;;  %v3315_v48 = vor.u32 %v4780_v35, %v3312_v36 }
  0x55   :  { %v3726_v61 = vld [vmem:[#allocation5 + $0x400] sm:$0xf]  ;;  %v4950_v4 = vld [vmem:[#allocation5 + $0x60c] sm:$0xf0]  ;;  %v4127_v11 = vor.u32 %v4986_v60, %v4126_v59  ;;  %1765 = vmatpush.bf16.msrb.mxu1 %v3871_v5  ;;  %v3440_v40 = vld [vmem:[#allocation5 + $0x1d0] sm:$0xf0] }
  0x56   :  { %v3854_v0 = vld [vmem:[#allocation5 + $0x500] sm:$0xf]  ;;  %v4982_v8 = vld [vmem:[#allocation5 + $0x70c] sm:$0xf0]  ;;  %v3727_v19 = vor.u32 %v4886_v62, %v3726_v61  ;;  %1779 = vmatpush.bf16.msrb.mxu2 %v3999_v6  ;;  %v4844_v41 = vld [vmem:[#allocation5 + $0x2c4] sm:$0xf]  ;;  %v3443_v49 = vor.u32 %v4812_v37, %v3440_v40 }
  0x57   :  { %v3982_v3 = vld [vmem:[#allocation5 + $0x600] sm:$0xf]  ;;  %v3198_v21 = vld [vmem:[#allocation2 + $0x10] sm:$0xf]  ;;  %v3855_v23 = vor.u32 %v4918_v2, %v3854_v0  ;;  %1793 = vmatpush.bf16.msrb.mxu3 %v4127_v11  ;;  %v3568_v42 = vld [vmem:[#allocation5 + $0x2d0] sm:$0xf0] }
  0x58   :  { %v4110_v7 = vld [vmem:[#allocation5 + $0x700] sm:$0xf]  ;;  %v4754_v22 = vld [vmem:[#allocation2 + $0x2c] sm:$0xf0]  ;;  %v3983_v24 = vor.u32 %v4950_v4, %v3982_v3  ;;  %1752 = vmatpush.bf16.msrb.mxu0 %v3727_v19  ;;  %v4876_v45 = vld [vmem:[#allocation5 + $0x3c4] sm:$0xf]  ;;  %v3571_v50 = vor.u32 %v4844_v41, %v3568_v42 }
  0x59   :  { %v4111_v28 = vor.u32 %v4982_v8, %v4110_v7  ;;  %v5373_v39 = vor.u32 %v4754_v22, %v3198_v21  ;;  %1766 = vmatpush.bf16.msrb.mxu1 %v3855_v23  ;;  %v3696_v46 = vld [vmem:[#allocation5 + $0x3d0] sm:$0xf0]  ;;  %v4776_v51 = vld [vmem:[#allocation5 + $0xa4] sm:$0xf] }
  0x5a   :  { %1780 = vmatpush.bf16.msrb.mxu2 %v3983_v24  ;;  %v3296_v52 = vld [vmem:[#allocation5 + $0xb0] sm:$0xf0]  ;;  %v4808_v53 = vld [vmem:[#allocation5 + $0x1a4] sm:$0xf]  ;;  %v3699_v54 = vor.u32 %v4876_v45, %v3696_v46 }
  0x5b   :  { %1794 = vmatpush.bf16.msrb.mxu3 %v4111_v28  ;;  %1753 = vmatmul.bf16.vlgmr.msrb.gmra.mxu0 %v5373_v39  ;;  %v3424_v55 = vld [vmem:[#allocation5 + $0x1b0] sm:$0xf0]  ;;  %v4840_v56 = vld [vmem:[#allocation5 + $0x2a4] sm:$0xf]  ;;  %v3299_v61 = vor.u32 %v4776_v51, %v3296_v52 }
  0x5c   :  { %1801 = vmatpush.bf16.msra.mxu0 %v3331_v29  ;;  %v3552_v57 = vld [vmem:[#allocation5 + $0x2b0] sm:$0xf0]  ;;  %1767 = vmatmul.bf16.vlgmr.msrb.gmra.mxu1 %v5377_v44  ;;  %v4872_v59 = vld [vmem:[#allocation5 + $0x3a4] sm:$0xf]  ;;  %v3427_v62 = vor.u32 %v4808_v53, %v3424_v55 }
  0x5d   :  { %1815 = vmatpush.bf16.msra.mxu1 %v3459_v33  ;;  %1781 = vmatmul.bf16.vlgmr.msrb.gmra.mxu2 %v5375_v43  ;;  %v3680_v60 = vld [vmem:[#allocation5 + $0x3b0] sm:$0xf0]  ;;  %v3555_v63 = vor.u32 %v4840_v56, %v3552_v57  ;;  %v4772_v0 = vld [vmem:[#allocation5 + $0x84] sm:$0xf] }
  0x5e   :  { %1829 = vmatpush.bf16.msra.mxu2 %v3587_v34  ;;  %1795 = vmatmul.bf16.vlgmr.msrb.gmra.mxu3 %v5379_v47  ;;  %v3280_v2 = vld [vmem:[#allocation5 + $0x90] sm:$0xf0]  ;;  %v4804_v3 = vld [vmem:[#allocation5 + $0x184] sm:$0xf]  ;;  %v3683_v4 = vor.u32 %v4872_v59, %v3680_v60 }
  0x5f   :  { %1843 = vmatpush.bf16.msra.mxu3 %v3715_v38  ;;  %v3408_v5 = vld [vmem:[#allocation5 + $0x190] sm:$0xf0]  ;;  %v4836_v6 = vld [vmem:[#allocation5 + $0x284] sm:$0xf]  ;;  %v3283_v11 = vor.u32 %v4772_v0, %v3280_v2 }
  0x60   :  { %1802 = vmatpush.bf16.msra.mxu0 %v3315_v48  ;;  %v3536_v7 = vld [vmem:[#allocation5 + $0x290] sm:$0xf0]  ;;  %v4868_v8 = vld [vmem:[#allocation5 + $0x384] sm:$0xf]  ;;  %v3411_v12 = vor.u32 %v4804_v3, %v3408_v5 }
  0x61   :  { %1816 = vmatpush.bf16.msra.mxu1 %v3443_v49  ;;  %v3664_v9 = vld [vmem:[#allocation5 + $0x390] sm:$0xf0]  ;;  %v3539_v13 = vor.u32 %v4836_v6, %v3536_v7  ;;  %v4768_v14 = vld [vmem:[#allocation5 + $0x64] sm:$0xf] }
  0x62   :  { %1830 = vmatpush.bf16.msra.mxu2 %v3571_v50  ;;  %v3264_v15 = vld [vmem:[#allocation5 + $0x70] sm:$0xf0]  ;;  %v4800_v16 = vld [vmem:[#allocation5 + $0x164] sm:$0xf]  ;;  %v3667_v18 = vor.u32 %v4868_v8, %v3664_v9 }
  0x63   :  { %1844 = vmatpush.bf16.msra.mxu3 %v3699_v54  ;;  %v3392_v19 = vld [vmem:[#allocation5 + $0x170] sm:$0xf0]  ;;  %v4832_v20 = vld [vmem:[#allocation5 + $0x264] sm:$0xf]  ;;  %v3267_v24 = vor.u32 %v4768_v14, %v3264_v15 }
  0x64   :  { %1803 = vmatpush.bf16.msra.mxu0 %v3299_v61  ;;  %v3520_v21 = vld [vmem:[#allocation5 + $0x270] sm:$0xf0]  ;;  %v4864_v22 = vld [vmem:[#allocation5 + $0x364] sm:$0xf]  ;;  %v3395_v25 = vor.u32 %v4800_v16, %v3392_v19 }
  0x65   :  { %1817 = vmatpush.bf16.msra.mxu1 %v3427_v62  ;;  %v3648_v23 = vld [vmem:[#allocation5 + $0x370] sm:$0xf0]  ;;  %v3523_v26 = vor.u32 %v4832_v20, %v3520_v21  ;;  %v4764_v27 = vld [vmem:[#allocation5 + $0x44] sm:$0xf] }
  0x66   :  { %1831 = vmatpush.bf16.msra.mxu2 %v3555_v63  ;;  %v3248_v28 = vld [vmem:[#allocation5 + $0x50] sm:$0xf0]  ;;  %v4796_v29 = vld [vmem:[#allocation5 + $0x144] sm:$0xf]  ;;  %v3651_v30 = vor.u32 %v4864_v22, %v3648_v23 }
  0x67   :  { %1845 = vmatpush.bf16.msra.mxu3 %v3683_v4  ;;  %v3376_v31 = vld [vmem:[#allocation5 + $0x150] sm:$0xf0]  ;;  %v4828_v32 = vld [vmem:[#allocation5 + $0x244] sm:$0xf]  ;;  %v3251_v36 = vor.u32 %v4764_v27, %v3248_v28 }
  0x68   :  { %1804 = vmatpush.bf16.msra.mxu0 %v3283_v11  ;;  %v3504_v33 = vld [vmem:[#allocation5 + $0x250] sm:$0xf0]  ;;  %v4860_v34 = vld [vmem:[#allocation5 + $0x344] sm:$0xf]  ;;  %v3379_v37 = vor.u32 %v4796_v29, %v3376_v31 }
  0x69   :  { %1818 = vmatpush.bf16.msra.mxu1 %v3411_v12  ;;  %v3632_v35 = vld [vmem:[#allocation5 + $0x350] sm:$0xf0]  ;;  %v3507_v38 = vor.u32 %v4828_v32, %v3504_v33  ;;  %v4760_v40 = vld [vmem:[#allocation5 + $0x24] sm:$0xf] }
  0x6a   :  { %1832 = vmatpush.bf16.msra.mxu2 %v3539_v13  ;;  %v3232_v41 = vld [vmem:[#allocation5 + $0x30] sm:$0xf0]  ;;  %v4792_v42 = vld [vmem:[#allocation5 + $0x124] sm:$0xf]  ;;  %v3635_v45 = vor.u32 %v4860_v34, %v3632_v35 }
  0x6b   :  { %1846 = vmatpush.bf16.msra.mxu3 %v3667_v18  ;;  %v3360_v46 = vld [vmem:[#allocation5 + $0x130] sm:$0xf0]  ;;  %v4824_v48 = vld [vmem:[#allocation5 + $0x224] sm:$0xf]  ;;  %v3235_v52 = vor.u32 %v4760_v40, %v3232_v41 }
  0x6c   :  { %1805 = vmatpush.bf16.msra.mxu0 %v3267_v24  ;;  %v3488_v49 = vld [vmem:[#allocation5 + $0x230] sm:$0xf0]  ;;  %v4856_v50 = vld [vmem:[#allocation5 + $0x324] sm:$0xf]  ;;  %v3363_v55 = vor.u32 %v4792_v42, %v3360_v46 }
  0x6d   :  { %1819 = vmatpush.bf16.msra.mxu1 %v3395_v25  ;;  %v3616_v51 = vld [vmem:[#allocation5 + $0x330] sm:$0xf0]  ;;  %v4756_v53 = vld [vmem:[#allocation5 + $0x4] sm:$0xf]  ;;  %v3491_v56 = vor.u32 %v4824_v48, %v3488_v49 }
  0x6e   :  { %1833 = vmatpush.bf16.msra.mxu2 %v3523_v26  ;;  %v3216_v54 = vld [vmem:[#allocation5 + $0x10] sm:$0xf0]  ;;  %v4788_v57 = vld [vmem:[#allocation5 + $0x104] sm:$0xf]  ;;  %v3619_v61 = vor.u32 %v4856_v50, %v3616_v51 }
  0x6f   :  { %1847 = vmatpush.bf16.msra.mxu3 %v3651_v30  ;;  %v3344_v59 = vld [vmem:[#allocation5 + $0x110] sm:$0xf0]  ;;  %v4820_v60 = vld [vmem:[#allocation5 + $0x204] sm:$0xf]  ;;  %v3219_v5 = vor.u32 %v4756_v53, %v3216_v54 }
  0x70   :  { %1806 = vmatpush.bf16.msra.mxu0 %v3251_v36  ;;  %v3472_v62 = vld [vmem:[#allocation5 + $0x210] sm:$0xf0]  ;;  %v4852_v63 = vld [vmem:[#allocation5 + $0x304] sm:$0xf]  ;;  %v3347_v9 = vor.u32 %v4788_v57, %v3344_v59 }
  0x71   :  { %1820 = vmatpush.bf16.msra.mxu1 %v3379_v37  ;;  %v3600_v0 = vld [vmem:[#allocation5 + $0x310] sm:$0xf0]  ;;  %v4912_v2 = vld [vmem:[#allocation5 + $0x4e4] sm:$0xf]  ;;  %v3475_v11 = vor.u32 %v4820_v60, %v3472_v62 }
  0x72   :  { %1834 = vmatpush.bf16.msra.mxu2 %v3507_v38  ;;  %v3840_v3 = vld [vmem:[#allocation5 + $0x4f0] sm:$0xf0]  ;;  %v4944_v4 = vld [vmem:[#allocation5 + $0x5e4] sm:$0xf]  ;;  %v3603_v14 = vor.u32 %v4852_v63, %v3600_v0 }
  0x73   :  { %1848 = vmatpush.bf16.msra.mxu3 %v3635_v45  ;;  %v3968_v6 = vld [vmem:[#allocation5 + $0x5f0] sm:$0xf0]  ;;  %v4976_v7 = vld [vmem:[#allocation5 + $0x6e4] sm:$0xf]  ;;  %v3843_v15 = vor.u32 %v4912_v2, %v3840_v3 }
  0x74   :  { %1807 = vmatpush.bf16.msra.mxu0 %v3235_v52  ;;  %v4096_v8 = vld [vmem:[#allocation5 + $0x6f0] sm:$0xf0]  ;;  %v5008_v12 = vld [vmem:[#allocation5 + $0x7e4] sm:$0xf]  ;;  %v3971_v16 = vor.u32 %v4944_v4, %v3968_v6 }
  0x75   :  { %1821 = vmatpush.bf16.msra.mxu1 %v3363_v55  ;;  %v4224_v13 = vld [vmem:[#allocation5 + $0x7f0] sm:$0xf0]  ;;  %v4099_v18 = vor.u32 %v4976_v7, %v4096_v8  ;;  %v4908_v19 = vld [vmem:[#allocation5 + $0x4c4] sm:$0xf] }
  0x76   :  { %1835 = vmatpush.bf16.msra.mxu2 %v3491_v56  ;;  %v3824_v20 = vld [vmem:[#allocation5 + $0x4d0] sm:$0xf0]  ;;  %v4940_v21 = vld [vmem:[#allocation5 + $0x5c4] sm:$0xf]  ;;  %v4227_v22 = vor.u32 %v5008_v12, %v4224_v13 }
  0x77   :  { %1849 = vmatpush.bf16.msra.mxu3 %v3619_v61  ;;  %v3952_v23 = vld [vmem:[#allocation5 + $0x5d0] sm:$0xf0]  ;;  %v4972_v24 = vld [vmem:[#allocation5 + $0x6c4] sm:$0xf]  ;;  %v3827_v28 = vor.u32 %v4908_v19, %v3824_v20 }
  0x78   :  { %1808 = vmatpush.bf16.msra.mxu0 %v3219_v5  ;;  %v4080_v25 = vld [vmem:[#allocation5 + $0x6d0] sm:$0xf0]  ;;  %v5004_v26 = vld [vmem:[#allocation5 + $0x7c4] sm:$0xf]  ;;  %v3955_v29 = vor.u32 %v4940_v21, %v3952_v23 }
  0x79   :  { %1822 = vmatpush.bf16.msra.mxu1 %v3347_v9  ;;  %v4208_v27 = vld [vmem:[#allocation5 + $0x7d0] sm:$0xf0]  ;;  %v4083_v30 = vor.u32 %v4972_v24, %v4080_v25  ;;  %v4904_v31 = vld [vmem:[#allocation5 + $0x4a4] sm:$0xf] }
  0x7a   :  { %1836 = vmatpush.bf16.msra.mxu2 %v3475_v11  ;;  %v3808_v32 = vld [vmem:[#allocation5 + $0x4b0] sm:$0xf0]  ;;  %v4936_v33 = vld [vmem:[#allocation5 + $0x5a4] sm:$0xf]  ;;  %v4211_v34 = vor.u32 %v5004_v26, %v4208_v27 }
  0x7b   :  { %1850 = vmatpush.bf16.msra.mxu3 %v3603_v14  ;;  %v3936_v35 = vld [vmem:[#allocation5 + $0x5b0] sm:$0xf0]  ;;  %v4968_v36 = vld [vmem:[#allocation5 + $0x6a4] sm:$0xf]  ;;  %1809 = vmatmul.bf16.vlgmr.msra.gmra.mxu0 %v5361_v58  ;;  %v3811_v41 = vor.u32 %v4904_v31, %v3808_v32 }
  0x7c   :  { %1857 = vmatpush.bf16.msrb.mxu0 %v3843_v15  ;;  %v4064_v37 = vld [vmem:[#allocation5 + $0x6b0] sm:$0xf0]  ;;  %v5000_v38 = vld [vmem:[#allocation5 + $0x7a4] sm:$0xf]  ;;  %1823 = vmatmul.bf16.vlgmr.msra.gmra.mxu1 %v5367_v10  ;;  %v3939_v42 = vor.u32 %v4936_v33, %v3936_v35 }
  0x7d   :  { %1871 = vmatpush.bf16.msrb.mxu1 %v3971_v16  ;;  %v4192_v40 = vld [vmem:[#allocation5 + $0x7b0] sm:$0xf0]  ;;  %1837 = vmatmul.bf16.vlgmr.msra.gmra.mxu2 %v5363_v1  ;;  %v4067_v45 = vor.u32 %v4968_v36, %v4064_v37  ;;  %v4900_v46 = vld [vmem:[#allocation5 + $0x484] sm:$0xf] }
  0x7e   :  { %1885 = vmatpush.bf16.msrb.mxu2 %v4099_v18  ;;  %1851 = vmatmul.bf16.vlgmr.msra.gmra.mxu3 %v5369_v17  ;;  %v3792_v48 = vld [vmem:[#allocation5 + $0x490] sm:$0xf0]  ;;  %v4932_v49 = vld [vmem:[#allocation5 + $0x584] sm:$0xf]  ;;  %v4195_v50 = vor.u32 %v5000_v38, %v4192_v40 }
  0x7f   :  { %1899 = vmatpush.bf16.msrb.mxu3 %v4227_v22  ;;  %v3920_v51 = vld [vmem:[#allocation5 + $0x590] sm:$0xf0]  ;;  %v4964_v52 = vld [vmem:[#allocation5 + $0x684] sm:$0xf]  ;;  %v3795_v56 = vor.u32 %v4900_v46, %v3792_v48  ;;  %v3334_v48 = vld [vmem:[#allocation5 + $0xe8] sm:$0xf] }
  0x80   :  { %1858 = vmatpush.bf16.msrb.mxu0 %v3827_v28  ;;  %v4048_v53 = vld [vmem:[#allocation5 + $0x690] sm:$0xf0]  ;;  %v4996_v54 = vld [vmem:[#allocation5 + $0x784] sm:$0xf]  ;;  %v3923_v57 = vor.u32 %v4932_v49, %v3920_v51  ;;  %v4787_v49 = vld [vmem:[#allocation5 + $0xf4] sm:$0xf0] }
  0x81   :  { %1872 = vmatpush.bf16.msrb.mxu1 %v3955_v29  ;;  %v4176_v55 = vld [vmem:[#allocation5 + $0x790] sm:$0xf0]  ;;  %v4051_v59 = vor.u32 %v4964_v52, %v4048_v53  ;;  %v4896_v60 = vld [vmem:[#allocation5 + $0x464] sm:$0xf]  ;;  %v4819_v52 = vld [vmem:[#allocation5 + $0x1f4] sm:$0xf0] }
  0x82   :  { %1886 = vmatpush.bf16.msrb.mxu2 %v4083_v30  ;;  %v3776_v61 = vld [vmem:[#allocation5 + $0x470] sm:$0xf0]  ;;  %v4928_v62 = vld [vmem:[#allocation5 + $0x564] sm:$0xf]  ;;  %v4179_v63 = vor.u32 %v4996_v54, %v4176_v55  ;;  %v3590_v53 = vld [vmem:[#allocation5 + $0x2e8] sm:$0xf] }
  0x83   :  { %1900 = vmatpush.bf16.msrb.mxu3 %v4211_v34  ;;  %v3904_v0 = vld [vmem:[#allocation5 + $0x570] sm:$0xf0]  ;;  %v4960_v2 = vld [vmem:[#allocation5 + $0x664] sm:$0xf]  ;;  %v3779_v6 = vor.u32 %v4896_v60, %v3776_v61  ;;  %v4851_v54 = vld [vmem:[#allocation5 + $0x2f4] sm:$0xf0]  ;;  %v3335_v61 = vor.u32 %v4787_v49, %v3334_v48 }
  0x84   :  { %1859 = vmatpush.bf16.msrb.mxu0 %v3811_v41  ;;  %v4032_v3 = vld [vmem:[#allocation5 + $0x670] sm:$0xf0]  ;;  %v4992_v4 = vld [vmem:[#allocation5 + $0x764] sm:$0xf]  ;;  %v3907_v7 = vor.u32 %v4928_v62, %v3904_v0  ;;  %v3318_v0 = vld [vmem:[#allocation5 + $0xc8] sm:$0xf] }
  0x85   :  { %1873 = vmatpush.bf16.msrb.mxu1 %v3939_v42  ;;  %v4160_v5 = vld [vmem:[#allocation5 + $0x770] sm:$0xf0]  ;;  %v4035_v8 = vor.u32 %v4960_v2, %v4032_v3  ;;  %v4892_v9 = vld [vmem:[#allocation5 + $0x444] sm:$0xf]  ;;  %v4783_v2 = vld [vmem:[#allocation5 + $0xd4] sm:$0xf0] }
  0x86   :  { %1887 = vmatpush.bf16.msrb.mxu2 %v4067_v45  ;;  %v3760_v11 = vld [vmem:[#allocation5 + $0x450] sm:$0xf0]  ;;  %v4924_v12 = vld [vmem:[#allocation5 + $0x544] sm:$0xf]  ;;  %v4163_v13 = vor.u32 %v4992_v4, %v4160_v5  ;;  %v3446_v3 = vld [vmem:[#allocation5 + $0x1c8] sm:$0xf] }
  0x87   :  { %1901 = vmatpush.bf16.msrb.mxu3 %v4195_v50  ;;  %v3888_v14 = vld [vmem:[#allocation5 + $0x550] sm:$0xf0]  ;;  %v4956_v15 = vld [vmem:[#allocation5 + $0x644] sm:$0xf]  ;;  %v3763_v20 = vor.u32 %v4892_v9, %v3760_v11  ;;  %v3462_v50 = vld [vmem:[#allocation5 + $0x1e8] sm:$0xf]  ;;  %v3319_v11 = vor.u32 %v4783_v2, %v3318_v0 }
  0x88   :  { %1860 = vmatpush.bf16.msrb.mxu0 %v3795_v56  ;;  %v4016_v16 = vld [vmem:[#allocation5 + $0x650] sm:$0xf0]  ;;  %v4988_v18 = vld [vmem:[#allocation5 + $0x744] sm:$0xf]  ;;  %v3891_v21 = vor.u32 %v4924_v12, %v3888_v14  ;;  %v3463_v62 = vor.u32 %v4819_v52, %v3462_v50  ;;  %v4815_v5 = vld [vmem:[#allocation5 + $0x1d4] sm:$0xf0] }
  0x89   :  { %1874 = vmatpush.bf16.msrb.mxu1 %v3923_v57  ;;  %v4144_v19 = vld [vmem:[#allocation5 + $0x750] sm:$0xf0]  ;;  %v4019_v22 = vor.u32 %v4956_v15, %v4016_v16  ;;  %v4888_v23 = vld [vmem:[#allocation5 + $0x424] sm:$0xf]  ;;  %v3718_v57 = vld [vmem:[#allocation5 + $0x3e8] sm:$0xf]  ;;  %v3447_v12 = vor.u32 %v4815_v5, %v3446_v3 }
  0x8a   :  { %1888 = vmatpush.bf16.msrb.mxu2 %v4051_v59  ;;  %v3744_v24 = vld [vmem:[#allocation5 + $0x430] sm:$0xf0]  ;;  %v4920_v25 = vld [vmem:[#allocation5 + $0x524] sm:$0xf]  ;;  %v4147_v26 = vor.u32 %v4988_v18, %v4144_v19  ;;  %v4883_v59 = vld [vmem:[#allocation5 + $0x3f4] sm:$0xf0] }
  0x8b   :  { %1902 = vmatpush.bf16.msrb.mxu3 %v4179_v63  ;;  %v3872_v27 = vld [vmem:[#allocation5 + $0x530] sm:$0xf0]  ;;  %v4952_v28 = vld [vmem:[#allocation5 + $0x624] sm:$0xf]  ;;  %v3747_v32 = vor.u32 %v4888_v23, %v3744_v24  ;;  %v3591_v63 = vor.u32 %v4851_v54, %v3590_v53  ;;  %v3719_v4 = vor.u32 %v4883_v59, %v3718_v57  ;;  %v4879_v9 = vld [vmem:[#allocation5 + $0x3d4] sm:$0xf0] }
  0x8c   :  { %1861 = vmatpush.bf16.msrb.mxu0 %v3779_v6  ;;  %v4000_v29 = vld [vmem:[#allocation5 + $0x630] sm:$0xf0]  ;;  %v4984_v30 = vld [vmem:[#allocation5 + $0x724] sm:$0xf]  ;;  %v3875_v35 = vor.u32 %v4920_v25, %v3872_v27  ;;  %v3574_v6 = vld [vmem:[#allocation5 + $0x2c8] sm:$0xf] }
  0x8d   :  { %1875 = vmatpush.bf16.msrb.mxu1 %v3907_v7  ;;  %v4128_v31 = vld [vmem:[#allocation5 + $0x730] sm:$0xf0]  ;;  %v4884_v33 = vld [vmem:[#allocation5 + $0x404] sm:$0xf]  ;;  %v4003_v36 = vor.u32 %v4952_v28, %v4000_v29  ;;  %v4847_v7 = vld [vmem:[#allocation5 + $0x2d4] sm:$0xf0] }
  0x8e   :  { %1889 = vmatpush.bf16.msrb.mxu2 %v4035_v8  ;;  %v3728_v34 = vld [vmem:[#allocation5 + $0x410] sm:$0xf0]  ;;  %v4916_v37 = vld [vmem:[#allocation5 + $0x504] sm:$0xf]  ;;  %v4131_v41 = vor.u32 %v4984_v30, %v4128_v31  ;;  %v3702_v8 = vld [vmem:[#allocation5 + $0x3c8] sm:$0xf] }
  0x8f   :  { %1903 = vmatpush.bf16.msrb.mxu3 %v4163_v13  ;;  %v3856_v38 = vld [vmem:[#allocation5 + $0x510] sm:$0xf0]  ;;  %v4948_v40 = vld [vmem:[#allocation5 + $0x604] sm:$0xf]  ;;  %v3731_v51 = vor.u32 %v4884_v33, %v3728_v34  ;;  %v3575_v13 = vor.u32 %v4847_v7, %v3574_v6  ;;  %v3302_v14 = vld [vmem:[#allocation5 + $0xa8] sm:$0xf]  ;;  %v3703_v18 = vor.u32 %v4879_v9, %v3702_v8 }
  0x90   :  { %1862 = vmatpush.bf16.msrb.mxu0 %v3763_v20  ;;  %v3984_v42 = vld [vmem:[#allocation5 + $0x610] sm:$0xf0]  ;;  %v4980_v45 = vld [vmem:[#allocation5 + $0x704] sm:$0xf]  ;;  %v3859_v55 = vor.u32 %v4916_v37, %v3856_v38  ;;  %v4779_v15 = vld [vmem:[#allocation5 + $0xb4] sm:$0xf0] }
  0x91   :  { %1876 = vmatpush.bf16.msrb.mxu1 %v3891_v21  ;;  %v4112_v46 = vld [vmem:[#allocation5 + $0x710] sm:$0xf0]  ;;  %v3987_v56 = vor.u32 %v4948_v40, %v3984_v42  ;;  %v3430_v16 = vld [vmem:[#allocation5 + $0x1a8] sm:$0xf]  ;;  %v4811_v19 = vld [vmem:[#allocation5 + $0x1b4] sm:$0xf0]  ;;  %v3303_v24 = vor.u32 %v4779_v15, %v3302_v14 }
  0x92   :  { %1890 = vmatpush.bf16.msrb.mxu2 %v4019_v22  ;;  %v4115_v60 = vor.u32 %v4980_v45, %v4112_v46  ;;  %v3558_v20 = vld [vmem:[#allocation5 + $0x2a8] sm:$0xf]  ;;  %v4843_v21 = vld [vmem:[#allocation5 + $0x2b4] sm:$0xf0]  ;;  %v3431_v25 = vor.u32 %v4811_v19, %v3430_v16 }
  0x93   :  { %1904 = vmatpush.bf16.msrb.mxu3 %v4147_v26  ;;  %v3686_v22 = vld [vmem:[#allocation5 + $0x3a8] sm:$0xf]  ;;  %v4875_v23 = vld [vmem:[#allocation5 + $0x3b4] sm:$0xf0]  ;;  %v3559_v26 = vor.u32 %v4843_v21, %v3558_v20 }
  0x94   :  { %1863 = vmatpush.bf16.msrb.mxu0 %v3747_v32  ;;  %v3286_v27 = vld [vmem:[#allocation5 + $0x88] sm:$0xf]  ;;  %v4775_v28 = vld [vmem:[#allocation5 + $0x94] sm:$0xf0]  ;;  %v3687_v30 = vor.u32 %v4875_v23, %v3686_v22 }
  0x95   :  { %1877 = vmatpush.bf16.msrb.mxu1 %v3875_v35  ;;  %v3414_v29 = vld [vmem:[#allocation5 + $0x188] sm:$0xf]  ;;  %v4807_v31 = vld [vmem:[#allocation5 + $0x194] sm:$0xf0] }
  0x96   :  { %1891 = vmatpush.bf16.msrb.mxu2 %v4003_v36  ;;  %v3542_v32 = vld [vmem:[#allocation5 + $0x288] sm:$0xf]  ;;  %v4839_v33 = vld [vmem:[#allocation5 + $0x294] sm:$0xf0]  ;;  %v3287_v36 = vor.u32 %v4775_v28, %v3286_v27  ;;  %v3415_v37 = vor.u32 %v4807_v31, %v3414_v29 }
  0x97   :  { %1905 = vmatpush.bf16.msrb.mxu3 %v4131_v41  ;;  %v3670_v34 = vld [vmem:[#allocation5 + $0x388] sm:$0xf]  ;;  %v4871_v35 = vld [vmem:[#allocation5 + $0x394] sm:$0xf0]  ;;  %v3543_v38 = vor.u32 %v4839_v33, %v3542_v32 }
  0x98   :  { %1864 = vmatpush.bf16.msrb.mxu0 %v3731_v51  ;;  %v3270_v40 = vld [vmem:[#allocation5 + $0x68] sm:$0xf]  ;;  %v4771_v41 = vld [vmem:[#allocation5 + $0x74] sm:$0xf0]  ;;  %v3671_v45 = vor.u32 %v4871_v35, %v3670_v34 }
  0x99   :  { %1878 = vmatpush.bf16.msrb.mxu1 %v3859_v55  ;;  %v3398_v42 = vld [vmem:[#allocation5 + $0x168] sm:$0xf]  ;;  %v4803_v46 = vld [vmem:[#allocation5 + $0x174] sm:$0xf0]  ;;  %v3271_v52 = vor.u32 %v4771_v41, %v3270_v40 }
  0x9a   :  { %1892 = vmatpush.bf16.msrb.mxu2 %v3987_v56  ;;  %v3526_v48 = vld [vmem:[#allocation5 + $0x268] sm:$0xf]  ;;  %v4835_v49 = vld [vmem:[#allocation5 + $0x274] sm:$0xf0]  ;;  %v3399_v53 = vor.u32 %v4803_v46, %v3398_v42 }
  0x9b   :  { %1906 = vmatpush.bf16.msrb.mxu3 %v4115_v60  ;;  %1865 = vmatmul.bf16.vlgmr.msrb.gmra.mxu0 %v5373_v39  ;;  %v3654_v50 = vld [vmem:[#allocation5 + $0x368] sm:$0xf]  ;;  %v4867_v51 = vld [vmem:[#allocation5 + $0x374] sm:$0xf0]  ;;  %v3527_v54 = vor.u32 %v4835_v49, %v3526_v48 }
  0x9c   :  { %1913 = vmatpush.bf16.msra.mxu0 %v3335_v61  ;;  %1879 = vmatmul.bf16.vlgmr.msrb.gmra.mxu1 %v5377_v44  ;;  %v3254_v55 = vld [vmem:[#allocation5 + $0x48] sm:$0xf]  ;;  %v4767_v56 = vld [vmem:[#allocation5 + $0x54] sm:$0xf0]  ;;  %v3655_v59 = vor.u32 %v4867_v51, %v3654_v50 }
  0x9d   :  { %1927 = vmatpush.bf16.msra.mxu1 %v3463_v62  ;;  %1893 = vmatmul.bf16.vlgmr.msrb.gmra.mxu2 %v5375_v43  ;;  %v3382_v57 = vld [vmem:[#allocation5 + $0x148] sm:$0xf]  ;;  %v4799_v60 = vld [vmem:[#allocation5 + $0x154] sm:$0xf0]  ;;  %v3255_v2 = vor.u32 %v4767_v56, %v3254_v55 }
  0x9e   :  { %1941 = vmatpush.bf16.msra.mxu2 %v3591_v63  ;;  %1907 = vmatmul.bf16.vlgmr.msrb.gmra.mxu3 %v5379_v47  ;;  %v3510_v61 = vld [vmem:[#allocation5 + $0x248] sm:$0xf]  ;;  %v4831_v62 = vld [vmem:[#allocation5 + $0x254] sm:$0xf0]  ;;  %v3383_v3 = vor.u32 %v4799_v60, %v3382_v57 }
  0x9f   :  { %1955 = vmatpush.bf16.msra.mxu3 %v3719_v4  ;;  %v3638_v63 = vld [vmem:[#allocation5 + $0x348] sm:$0xf]  ;;  %v4863_v0 = vld [vmem:[#allocation5 + $0x354] sm:$0xf0]  ;;  %v3511_v4 = vor.u32 %v4831_v62, %v3510_v61 }
  0xa0   :  { %1914 = vmatpush.bf16.msra.mxu0 %v3319_v11  ;;  %v3238_v5 = vld [vmem:[#allocation5 + $0x28] sm:$0xf]  ;;  %v4763_v6 = vld [vmem:[#allocation5 + $0x34] sm:$0xf0]  ;;  %v3639_v8 = vor.u32 %v4863_v0, %v3638_v63 }
  0xa1   :  { %1928 = vmatpush.bf16.msra.mxu1 %v3447_v12  ;;  %v3366_v7 = vld [vmem:[#allocation5 + $0x128] sm:$0xf]  ;;  %v4795_v9 = vld [vmem:[#allocation5 + $0x134] sm:$0xf0]  ;;  %v3239_v15 = vor.u32 %v4763_v6, %v3238_v5 }
  0xa2   :  { %1942 = vmatpush.bf16.msra.mxu2 %v3575_v13  ;;  %v3494_v11 = vld [vmem:[#allocation5 + $0x228] sm:$0xf]  ;;  %v4827_v12 = vld [vmem:[#allocation5 + $0x234] sm:$0xf0]  ;;  %v3367_v19 = vor.u32 %v4795_v9, %v3366_v7 }
  0xa3   :  { %1956 = vmatpush.bf16.msra.mxu3 %v3703_v18  ;;  %v3622_v13 = vld [vmem:[#allocation5 + $0x328] sm:$0xf]  ;;  %v4859_v14 = vld [vmem:[#allocation5 + $0x334] sm:$0xf0]  ;;  %v3495_v20 = vor.u32 %v4827_v12, %v3494_v11 }
  0xa4   :  { %1915 = vmatpush.bf16.msra.mxu0 %v3303_v24  ;;  %v3222_v16 = vld [vmem:[#allocation5 + $0x8] sm:$0xf]  ;;  %v4759_v18 = vld [vmem:[#allocation5 + $0x14] sm:$0xf0]  ;;  %v3623_v24 = vor.u32 %v4859_v14, %v3622_v13 }
  0xa5   :  { %1929 = vmatpush.bf16.msra.mxu1 %v3431_v25  ;;  %v3350_v21 = vld [vmem:[#allocation5 + $0x108] sm:$0xf]  ;;  %v4791_v22 = vld [vmem:[#allocation5 + $0x114] sm:$0xf0]  ;;  %v3223_v31 = vor.u32 %v4759_v18, %v3222_v16 }
  0xa6   :  { %1943 = vmatpush.bf16.msra.mxu2 %v3559_v26  ;;  %v3478_v23 = vld [vmem:[#allocation5 + $0x208] sm:$0xf]  ;;  %v4823_v25 = vld [vmem:[#allocation5 + $0x214] sm:$0xf0]  ;;  %v3351_v35 = vor.u32 %v4791_v22, %v3350_v21 }
  0xa7   :  { %1957 = vmatpush.bf16.msra.mxu3 %v3687_v30  ;;  %v3606_v26 = vld [vmem:[#allocation5 + $0x308] sm:$0xf]  ;;  %v4855_v27 = vld [vmem:[#allocation5 + $0x314] sm:$0xf0] }
  0xa8   :  { %1916 = vmatpush.bf16.msra.mxu0 %v3287_v36  ;;  %v3846_v28 = vld [vmem:[#allocation5 + $0x4e8] sm:$0xf]  ;;  %v4915_v29 = vld [vmem:[#allocation5 + $0x4f4] sm:$0xf0]  ;;  %v3479_v36 = vor.u32 %v4823_v25, %v3478_v23  ;;  %v3607_v40 = vor.u32 %v4855_v27, %v3606_v26 }
  0xa9   :  { %1930 = vmatpush.bf16.msra.mxu1 %v3415_v37  ;;  %v3974_v30 = vld [vmem:[#allocation5 + $0x5e8] sm:$0xf]  ;;  %v4947_v32 = vld [vmem:[#allocation5 + $0x5f4] sm:$0xf0]  ;;  %v3847_v41 = vor.u32 %v4915_v29, %v3846_v28 }
  0xaa   :  { %1944 = vmatpush.bf16.msra.mxu2 %v3543_v38  ;;  %v4102_v33 = vld [vmem:[#allocation5 + $0x6e8] sm:$0xf]  ;;  %v4979_v34 = vld [vmem:[#allocation5 + $0x6f4] sm:$0xf0]  ;;  %v3975_v42 = vor.u32 %v4947_v32, %v3974_v30 }
  0xab   :  { %1958 = vmatpush.bf16.msra.mxu3 %v3671_v45  ;;  %v4230_v37 = vld [vmem:[#allocation5 + $0x7e8] sm:$0xf]  ;;  %v5011_v38 = vld [vmem:[#allocation5 + $0x7f4] sm:$0xf0]  ;;  %v4103_v45 = vor.u32 %v4979_v34, %v4102_v33 }
  0xac   :  { %1917 = vmatpush.bf16.msra.mxu0 %v3271_v52  ;;  %v3830_v46 = vld [vmem:[#allocation5 + $0x4c8] sm:$0xf]  ;;  %v4911_v48 = vld [vmem:[#allocation5 + $0x4d4] sm:$0xf0]  ;;  %v4231_v50 = vor.u32 %v5011_v38, %v4230_v37 }
  0xad   :  { %1931 = vmatpush.bf16.msra.mxu1 %v3399_v53  ;;  %v3958_v49 = vld [vmem:[#allocation5 + $0x5c8] sm:$0xf]  ;;  %v4943_v51 = vld [vmem:[#allocation5 + $0x5d4] sm:$0xf0]  ;;  %v3831_v56 = vor.u32 %v4911_v48, %v3830_v46 }
  0xae   :  { %1945 = vmatpush.bf16.msra.mxu2 %v3527_v54  ;;  %v4086_v52 = vld [vmem:[#allocation5 + $0x6c8] sm:$0xf]  ;;  %v4975_v53 = vld [vmem:[#allocation5 + $0x6d4] sm:$0xf0]  ;;  %v3959_v57 = vor.u32 %v4943_v51, %v3958_v49 }
  0xaf   :  { %1959 = vmatpush.bf16.msra.mxu3 %v3655_v59  ;;  %v4214_v54 = vld [vmem:[#allocation5 + $0x7c8] sm:$0xf]  ;;  %v5007_v55 = vld [vmem:[#allocation5 + $0x7d4] sm:$0xf0]  ;;  %v4087_v59 = vor.u32 %v4975_v53, %v4086_v52 }
  0xb0   :  { %1918 = vmatpush.bf16.msra.mxu0 %v3255_v2  ;;  %v3814_v60 = vld [vmem:[#allocation5 + $0x4a8] sm:$0xf]  ;;  %v4907_v61 = vld [vmem:[#allocation5 + $0x4b4] sm:$0xf0]  ;;  %v4215_v63 = vor.u32 %v5007_v55, %v4214_v54 }
  0xb1   :  { %1932 = vmatpush.bf16.msra.mxu1 %v3383_v3  ;;  %v3942_v62 = vld [vmem:[#allocation5 + $0x5a8] sm:$0xf]  ;;  %v4939_v0 = vld [vmem:[#allocation5 + $0x5b4] sm:$0xf0]  ;;  %v3815_v6 = vor.u32 %v4907_v61, %v3814_v60 }
  0xb2   :  { %1946 = vmatpush.bf16.msra.mxu2 %v3511_v4  ;;  %v4070_v2 = vld [vmem:[#allocation5 + $0x6a8] sm:$0xf]  ;;  %v4971_v3 = vld [vmem:[#allocation5 + $0x6b4] sm:$0xf0]  ;;  %v3943_v7 = vor.u32 %v4939_v0, %v3942_v62 }
  0xb3   :  { %1960 = vmatpush.bf16.msra.mxu3 %v3639_v8  ;;  %v4198_v4 = vld [vmem:[#allocation5 + $0x7a8] sm:$0xf]  ;;  %v5003_v5 = vld [vmem:[#allocation5 + $0x7b4] sm:$0xf0]  ;;  %v4071_v8 = vor.u32 %v4971_v3, %v4070_v2 }
  0xb4   :  { %1919 = vmatpush.bf16.msra.mxu0 %v3239_v15  ;;  %v3798_v9 = vld [vmem:[#allocation5 + $0x488] sm:$0xf]  ;;  %v4903_v11 = vld [vmem:[#allocation5 + $0x494] sm:$0xf0]  ;;  %v4199_v13 = vor.u32 %v5003_v5, %v4198_v4 }
  0xb5   :  { %1933 = vmatpush.bf16.msra.mxu1 %v3367_v19  ;;  %v3926_v12 = vld [vmem:[#allocation5 + $0x588] sm:$0xf]  ;;  %v4935_v14 = vld [vmem:[#allocation5 + $0x594] sm:$0xf0] }
  0xb6   :  { %1947 = vmatpush.bf16.msra.mxu2 %v3495_v20  ;;  %v4054_v15 = vld [vmem:[#allocation5 + $0x688] sm:$0xf]  ;;  %v4967_v16 = vld [vmem:[#allocation5 + $0x694] sm:$0xf0]  ;;  %v3799_v20 = vor.u32 %v4903_v11, %v3798_v9  ;;  %v3927_v21 = vor.u32 %v4935_v14, %v3926_v12  ;;  %v4785_v11 = vld [vmem:[#allocation5 + $0xec] sm:$0xf] }
  0xb7   :  { %1961 = vmatpush.bf16.msra.mxu3 %v3623_v24  ;;  %v4182_v18 = vld [vmem:[#allocation5 + $0x788] sm:$0xf]  ;;  %v4999_v19 = vld [vmem:[#allocation5 + $0x794] sm:$0xf0]  ;;  %v4055_v22 = vor.u32 %v4967_v16, %v4054_v15  ;;  %v3336_v12 = vld [vmem:[#allocation5 + $0xf8] sm:$0xf0] }
  0xb8   :  { %1920 = vmatpush.bf16.msra.mxu0 %v3223_v31  ;;  %v3782_v23 = vld [vmem:[#allocation5 + $0x468] sm:$0xf]  ;;  %v4899_v24 = vld [vmem:[#allocation5 + $0x474] sm:$0xf0]  ;;  %v4183_v26 = vor.u32 %v4999_v19, %v4182_v18  ;;  %v3464_v15 = vld [vmem:[#allocation5 + $0x1f8] sm:$0xf0] }
  0xb9   :  { %1934 = vmatpush.bf16.msra.mxu1 %v3351_v35  ;;  %v3910_v25 = vld [vmem:[#allocation5 + $0x568] sm:$0xf]  ;;  %v4931_v27 = vld [vmem:[#allocation5 + $0x574] sm:$0xf0]  ;;  %v3783_v32 = vor.u32 %v4899_v24, %v3782_v23  ;;  %v4849_v16 = vld [vmem:[#allocation5 + $0x2ec] sm:$0xf]  ;;  %v3339_v24 = vor.u32 %v4785_v11, %v3336_v12 }
  0xba   :  { %1948 = vmatpush.bf16.msra.mxu2 %v3479_v36  ;;  %v4038_v28 = vld [vmem:[#allocation5 + $0x668] sm:$0xf]  ;;  %v4963_v29 = vld [vmem:[#allocation5 + $0x674] sm:$0xf0]  ;;  %v3911_v33 = vor.u32 %v4931_v27, %v3910_v25  ;;  %v3592_v18 = vld [vmem:[#allocation5 + $0x2f8] sm:$0xf0] }
  0xbb   :  { %1962 = vmatpush.bf16.msra.mxu3 %v3607_v40  ;;  %1921 = vmatmul.bf16.vlgmr.msra.gmra.mxu0 %v5361_v58  ;;  %v4166_v30 = vld [vmem:[#allocation5 + $0x768] sm:$0xf]  ;;  %v4995_v31 = vld [vmem:[#allocation5 + $0x774] sm:$0xf0]  ;;  %v4039_v34 = vor.u32 %v4963_v29, %v4038_v28  ;;  %v4781_v27 = vld [vmem:[#allocation5 + $0xcc] sm:$0xf] }
  0xbc   :  { %1969 = vmatpush.bf16.msrb.mxu0 %v3847_v41  ;;  %1935 = vmatmul.bf16.vlgmr.msra.gmra.mxu1 %v5367_v10  ;;  %v3766_v35 = vld [vmem:[#allocation5 + $0x448] sm:$0xf]  ;;  %v4895_v36 = vld [vmem:[#allocation5 + $0x454] sm:$0xf0]  ;;  %v4167_v38 = vor.u32 %v4995_v31, %v4166_v30  ;;  %v3320_v28 = vld [vmem:[#allocation5 + $0xd8] sm:$0xf0] }
  0xbd   :  { %1983 = vmatpush.bf16.msrb.mxu1 %v3975_v42  ;;  %1949 = vmatmul.bf16.vlgmr.msra.gmra.mxu2 %v5363_v1  ;;  %v3894_v37 = vld [vmem:[#allocation5 + $0x548] sm:$0xf]  ;;  %v4927_v40 = vld [vmem:[#allocation5 + $0x554] sm:$0xf0]  ;;  %v3767_v48 = vor.u32 %v4895_v36, %v3766_v35  ;;  %v4813_v29 = vld [vmem:[#allocation5 + $0x1cc] sm:$0xf]  ;;  %v3323_v36 = vor.u32 %v4781_v27, %v3320_v28 }
  0xbe   :  { %1997 = vmatpush.bf16.msrb.mxu2 %v4103_v45  ;;  %1963 = vmatmul.bf16.vlgmr.msra.gmra.mxu3 %v5369_v17  ;;  %v4022_v41 = vld [vmem:[#allocation5 + $0x648] sm:$0xf]  ;;  %v4959_v42 = vld [vmem:[#allocation5 + $0x654] sm:$0xf0]  ;;  %v3895_v49 = vor.u32 %v4927_v40, %v3894_v37  ;;  %v3448_v31 = vld [vmem:[#allocation5 + $0x1d8] sm:$0xf0] }
  0xbf   :  { %2011 = vmatpush.bf16.msrb.mxu3 %v4231_v50  ;;  %v4150_v45 = vld [vmem:[#allocation5 + $0x748] sm:$0xf]  ;;  %v4991_v46 = vld [vmem:[#allocation5 + $0x754] sm:$0xf0]  ;;  %v4023_v50 = vor.u32 %v4959_v42, %v4022_v41  ;;  %v3704_v35 = vld [vmem:[#allocation5 + $0x3d8] sm:$0xf0]  ;;  %v3451_v37 = vor.u32 %v4813_v29, %v3448_v31 }
  0xc0   :  { %1970 = vmatpush.bf16.msrb.mxu0 %v3831_v56  ;;  %v3750_v51 = vld [vmem:[#allocation5 + $0x428] sm:$0xf]  ;;  %v4891_v52 = vld [vmem:[#allocation5 + $0x434] sm:$0xf0]  ;;  %v4151_v54 = vor.u32 %v4991_v46, %v4150_v45  ;;  %v4777_v40 = vld [vmem:[#allocation5 + $0xac] sm:$0xf] }
  0xc1   :  { %1984 = vmatpush.bf16.msrb.mxu1 %v3959_v57  ;;  %v3878_v53 = vld [vmem:[#allocation5 + $0x528] sm:$0xf]  ;;  %v4923_v55 = vld [vmem:[#allocation5 + $0x534] sm:$0xf0]  ;;  %v3751_v61 = vor.u32 %v4891_v52, %v3750_v51  ;;  %v3304_v41 = vld [vmem:[#allocation5 + $0xb8] sm:$0xf0] }
  0xc2   :  { %1998 = vmatpush.bf16.msrb.mxu2 %v4087_v59  ;;  %v4006_v56 = vld [vmem:[#allocation5 + $0x628] sm:$0xf]  ;;  %v4955_v57 = vld [vmem:[#allocation5 + $0x634] sm:$0xf0]  ;;  %v3879_v0 = vor.u32 %v4923_v55, %v3878_v53  ;;  %v4809_v42 = vld [vmem:[#allocation5 + $0x1ac] sm:$0xf]  ;;  %v3307_v52 = vor.u32 %v4777_v40, %v3304_v41 }
  0xc3   :  { %2012 = vmatpush.bf16.msrb.mxu3 %v4215_v63  ;;  %v4134_v59 = vld [vmem:[#allocation5 + $0x728] sm:$0xf]  ;;  %v4987_v60 = vld [vmem:[#allocation5 + $0x734] sm:$0xf0]  ;;  %v4007_v2 = vor.u32 %v4955_v57, %v4006_v56  ;;  %v3432_v46 = vld [vmem:[#allocation5 + $0x1b8] sm:$0xf0] }
  0xc4   :  { %1971 = vmatpush.bf16.msrb.mxu0 %v3815_v6  ;;  %v3734_v62 = vld [vmem:[#allocation5 + $0x408] sm:$0xf]  ;;  %v4887_v63 = vld [vmem:[#allocation5 + $0x414] sm:$0xf0]  ;;  %v4135_v6 = vor.u32 %v4987_v60, %v4134_v59  ;;  %v3688_v51 = vld [vmem:[#allocation5 + $0x3b8] sm:$0xf0]  ;;  %v3435_v53 = vor.u32 %v4809_v42, %v3432_v46 }
  0xc5   :  { %1985 = vmatpush.bf16.msrb.mxu1 %v3943_v7  ;;  %v3862_v3 = vld [vmem:[#allocation5 + $0x508] sm:$0xf]  ;;  %v4919_v4 = vld [vmem:[#allocation5 + $0x514] sm:$0xf0]  ;;  %v3735_v14 = vor.u32 %v4887_v63, %v3734_v62  ;;  %v4773_v55 = vld [vmem:[#allocation5 + $0x8c] sm:$0xf] }
  0xc6   :  { %1999 = vmatpush.bf16.msrb.mxu2 %v4071_v8  ;;  %v3990_v5 = vld [vmem:[#allocation5 + $0x608] sm:$0xf]  ;;  %v4951_v7 = vld [vmem:[#allocation5 + $0x614] sm:$0xf0]  ;;  %v3863_v19 = vor.u32 %v4919_v4, %v3862_v3  ;;  %v3288_v56 = vld [vmem:[#allocation5 + $0x98] sm:$0xf0]  ;;  %v5401_v3 = vpop.f32.mrf.mxu0 }
  0xc7   :  { %2013 = vmatpush.bf16.msrb.mxu3 %v4199_v13  ;;  %v4118_v8 = vld [vmem:[#allocation5 + $0x708] sm:$0xf]  ;;  %v4983_v9 = vld [vmem:[#allocation5 + $0x714] sm:$0xf0]  ;;  %v4817_v13 = vld [vmem:[#allocation5 + $0x1ec] sm:$0xf] }
  0xc8   :  { %1972 = vmatpush.bf16.msrb.mxu0 %v3799_v20  ;;  %v3991_v20 = vor.u32 %v4951_v7, %v3990_v5  ;;  %v4119_v23 = vor.u32 %v4983_v9, %v4118_v8  ;;  %v3467_v25 = vor.u32 %v4817_v13, %v3464_v15  ;;  %v4805_v57 = vld [vmem:[#allocation5 + $0x18c] sm:$0xf]  ;;  %v3416_v60 = vld [vmem:[#allocation5 + $0x198] sm:$0xf0]  ;;  %v5403_v9 = vpop.f32.mrf.mxu1 }
  0xc9   :  { %1986 = vmatpush.bf16.msrb.mxu1 %v3927_v21  ;;  %v4881_v21 = vld [vmem:[#allocation5 + $0x3ec] sm:$0xf]  ;;  %v3544_v62 = vld [vmem:[#allocation5 + $0x298] sm:$0xf0]  ;;  %v3419_v4 = vor.u32 %v4805_v57, %v3416_v60 }
  0xca   :  { %2000 = vmatpush.bf16.msrb.mxu2 %v4055_v22  ;;  %v3720_v22 = vld [vmem:[#allocation5 + $0x3f8] sm:$0xf0]  ;;  %v4869_v63 = vld [vmem:[#allocation5 + $0x38c] sm:$0xf] }
  0xcb   :  { %2014 = vmatpush.bf16.msrb.mxu3 %v4183_v26  ;;  %v3595_v26 = vor.u32 %v4849_v16, %v3592_v18  ;;  %v3723_v30 = vor.u32 %v4881_v21, %v3720_v22  ;;  %v3272_v7 = vld [vmem:[#allocation5 + $0x78] sm:$0xf0]  ;;  %v4801_v8 = vld [vmem:[#allocation5 + $0x16c] sm:$0xf] }
  0xcc   :  { %1973 = vmatpush.bf16.msrb.mxu0 %v3783_v32  ;;  %v4845_v32 = vld [vmem:[#allocation5 + $0x2cc] sm:$0xf]  ;;  %v3400_v12 = vld [vmem:[#allocation5 + $0x178] sm:$0xf0] }
  0xcd   :  { %1987 = vmatpush.bf16.msrb.mxu1 %v3911_v33  ;;  %v3576_v33 = vld [vmem:[#allocation5 + $0x2d8] sm:$0xf0]  ;;  %v4833_v13 = vld [vmem:[#allocation5 + $0x26c] sm:$0xf] }
  0xce   :  { %2001 = vmatpush.bf16.msrb.mxu2 %v4039_v34  ;;  %v4877_v34 = vld [vmem:[#allocation5 + $0x3cc] sm:$0xf]  ;;  %v3656_v16 = vld [vmem:[#allocation5 + $0x378] sm:$0xf0] }
  0xcf   :  { %2015 = vmatpush.bf16.msrb.mxu3 %v4167_v38  ;;  %v3579_v38 = vor.u32 %v4845_v32, %v3576_v33  ;;  %v3707_v45 = vor.u32 %v4877_v34, %v3704_v35  ;;  %v4865_v15 = vld [vmem:[#allocation5 + $0x36c] sm:$0xf]  ;;  %v3256_v22 = vld [vmem:[#allocation5 + $0x58] sm:$0xf0]  ;;  %v5407_v32 = vpop.f32.mrf.mxu3 }
  0xd0   :  { %1974 = vmatpush.bf16.msrb.mxu0 %v3767_v48  ;;  %v4841_v48 = vld [vmem:[#allocation5 + $0x2ac] sm:$0xf]  ;;  %v3512_v27 = vld [vmem:[#allocation5 + $0x258] sm:$0xf0] }
  0xd1   :  { %1988 = vmatpush.bf16.msrb.mxu1 %v3895_v49  ;;  %v3560_v49 = vld [vmem:[#allocation5 + $0x2b8] sm:$0xf0]  ;;  %v4765_v21 = vld [vmem:[#allocation5 + $0x4c] sm:$0xf] }
  0xd2   :  { %2002 = vmatpush.bf16.msrb.mxu2 %v4023_v50  ;;  %v4873_v50 = vld [vmem:[#allocation5 + $0x3ac] sm:$0xf]  ;;  %v3640_v29 = vld [vmem:[#allocation5 + $0x358] sm:$0xf0]  ;;  %v3259_v31 = vor.u32 %v4765_v21, %v3256_v22 }
  0xd3   :  { %2016 = vmatpush.bf16.msrb.mxu3 %v4151_v54  ;;  %v3563_v54 = vor.u32 %v4841_v48, %v3560_v49  ;;  %v3691_v59 = vor.u32 %v4873_v50, %v3688_v51  ;;  %v4861_v28 = vld [vmem:[#allocation5 + $0x34c] sm:$0xf]  ;;  %v3368_v40 = vld [vmem:[#allocation5 + $0x138] sm:$0xf0]  ;;  %v5411_v49 = vpop.f32.mrf.mxu1 }
  0xd4   :  { %1975 = vmatpush.bf16.msrb.mxu0 %v3751_v61  ;;  %v4837_v61 = vld [vmem:[#allocation5 + $0x28c] sm:$0xf]  ;;  %v3496_v42 = vld [vmem:[#allocation5 + $0x238] sm:$0xf0] }
  0xd5   :  { %1989 = vmatpush.bf16.msrb.mxu1 %v3879_v0  ;;  %v3672_v0 = vld [vmem:[#allocation5 + $0x398] sm:$0xf0]  ;;  %v3547_v5 = vor.u32 %v4837_v61, %v3544_v62  ;;  %v4761_v35 = vld [vmem:[#allocation5 + $0x2c] sm:$0xf] }
  0xd6   :  { %2003 = vmatpush.bf16.msrb.mxu2 %v4007_v2  ;;  %v3291_v2 = vor.u32 %v4773_v55, %v3288_v56  ;;  %v3675_v11 = vor.u32 %v4869_v63, %v3672_v0  ;;  %v4825_v41 = vld [vmem:[#allocation5 + $0x22c] sm:$0xf]  ;;  %v3624_v48 = vld [vmem:[#allocation5 + $0x338] sm:$0xf0] }
  0xd7   :  { %2017 = vmatpush.bf16.msrb.mxu3 %v4135_v6  ;;  %v4769_v6 = vld [vmem:[#allocation5 + $0x6c] sm:$0xf]  ;;  %v3352_v56 = vld [vmem:[#allocation5 + $0x118] sm:$0xf0] }
  0xd8   :  { %1976 = vmatpush.bf16.msrb.mxu0 %v3735_v14  ;;  %v3528_v14 = vld [vmem:[#allocation5 + $0x278] sm:$0xf0]  ;;  %v3275_v18 = vor.u32 %v4769_v6, %v3272_v7  ;;  %v4857_v46 = vld [vmem:[#allocation5 + $0x32c] sm:$0xf] }
  0xd9   :  { %1990 = vmatpush.bf16.msrb.mxu1 %v3863_v19  ;;  %v3403_v19 = vor.u32 %v4801_v8, %v3400_v12  ;;  %v4757_v51 = vld [vmem:[#allocation5 + $0xc] sm:$0xf]  ;;  %v3480_v60 = vld [vmem:[#allocation5 + $0x218] sm:$0xf0] }
  0xda   :  { %2004 = vmatpush.bf16.msrb.mxu2 %v3991_v20  ;;  %v3531_v20 = vor.u32 %v4833_v13, %v3528_v14  ;;  %v4789_v55 = vld [vmem:[#allocation5 + $0x10c] sm:$0xf]  ;;  %v3608_v62 = vld [vmem:[#allocation5 + $0x318] sm:$0xf0] }
  0xdb   :  { %2018 = vmatpush.bf16.msrb.mxu3 %v4119_v23  ;;  %1977 = vmatmul.bf16.vlgmr.msrb.gmra.mxu0 %v5373_v39  ;;  %v4797_v23 = vld [vmem:[#allocation5 + $0x14c] sm:$0xf]  ;;  %v3848_v0 = vld [vmem:[#allocation5 + $0x4f8] sm:$0xf0]  ;;  %v3355_v8 = vor.u32 %v4789_v55, %v3352_v56 }
  0xdc   :  { %2025 = vmatpush.bf16.msra.mxu0 %v3339_v24  ;;  %1991 = vmatmul.bf16.vlgmr.msrb.gmra.mxu1 %v5377_v44  ;;  %v3659_v24 = vor.u32 %v4865_v15, %v3656_v16  ;;  %v4821_v57 = vld [vmem:[#allocation5 + $0x20c] sm:$0xf]  ;;  %v4104_v7 = vld [vmem:[#allocation5 + $0x6f8] sm:$0xf0] }
  0xdd   :  { %2039 = vmatpush.bf16.msra.mxu1 %v3467_v25  ;;  %2005 = vmatmul.bf16.vlgmr.msrb.gmra.mxu2 %v5375_v43  ;;  %v3384_v25 = vld [vmem:[#allocation5 + $0x158] sm:$0xf0]  ;;  %v4853_v61 = vld [vmem:[#allocation5 + $0x30c] sm:$0xf] }
  0xde   :  { %2053 = vmatpush.bf16.msra.mxu2 %v3595_v26  ;;  %2019 = vmatmul.bf16.vlgmr.msrb.gmra.mxu3 %v5379_v47  ;;  %v4829_v26 = vld [vmem:[#allocation5 + $0x24c] sm:$0xf]  ;;  %v3387_v33 = vor.u32 %v4797_v23, %v3384_v25  ;;  %v4232_v13 = vld [vmem:[#allocation5 + $0x7f8] sm:$0xf0]  ;;  %v3611_v15 = vor.u32 %v4853_v61, %v3608_v62 }
  0xdf   :  { %2067 = vmatpush.bf16.msra.mxu3 %v3723_v30  ;;  %v5405_v30 = vpop.f32.mrf.mxu2  ;;  %v3515_v34 = vor.u32 %v4829_v26, %v3512_v27  ;;  %v4913_v63 = vld [vmem:[#allocation5 + $0x4ec] sm:$0xf]  ;;  %v3832_v22 = vld [vmem:[#allocation5 + $0x4d8] sm:$0xf0] }
  0xe0   :  { %2026 = vmatpush.bf16.msra.mxu0 %v3323_v36  ;;  %v3240_v36 = vld [vmem:[#allocation5 + $0x38] sm:$0xf0]  ;;  %v4977_v6 = vld [vmem:[#allocation5 + $0x6ec] sm:$0xf]  ;;  %v3851_v16 = vor.u32 %v4913_v63, %v3848_v0 }
  0xe1   :  { %2040 = vmatpush.bf16.msra.mxu1 %v3451_v37  ;;  %v4793_v37 = vld [vmem:[#allocation5 + $0x12c] sm:$0xf]  ;;  %v3243_v50 = vor.u32 %v4761_v35, %v3240_v36  ;;  %v3960_v25 = vld [vmem:[#allocation5 + $0x5d8] sm:$0xf0] }
  0xe2   :  { %2054 = vmatpush.bf16.msra.mxu2 %v3579_v38  ;;  %v3643_v38 = vor.u32 %v4861_v28, %v3640_v29  ;;  %v5009_v12 = vld [vmem:[#allocation5 + $0x7ec] sm:$0xf]  ;;  %v4088_v27 = vld [vmem:[#allocation5 + $0x6d8] sm:$0xf0] }
  0xe3   :  { %2068 = vmatpush.bf16.msra.mxu3 %v3707_v45  ;;  %v5409_v45 = vpop.f32.mrf.mxu0  ;;  %v4909_v21 = vld [vmem:[#allocation5 + $0x4cc] sm:$0xf]  ;;  %v3800_v56 = vld [vmem:[#allocation5 + $0x498] sm:$0xf0] }
  0xe4   :  { %2027 = vmatpush.bf16.msra.mxu0 %v3307_v52  ;;  %v3224_v52 = vld [vmem:[#allocation5 + $0x18] sm:$0xf0]  ;;  %v4941_v23 = vld [vmem:[#allocation5 + $0x5cc] sm:$0xf] }
  0xe5   :  { %2041 = vmatpush.bf16.msra.mxu1 %v3435_v53  ;;  %v3371_v53 = vor.u32 %v4793_v37, %v3368_v40  ;;  %v4973_v26 = vld [vmem:[#allocation5 + $0x6cc] sm:$0xf]  ;;  %v3963_v35 = vor.u32 %v4941_v23, %v3960_v25  ;;  %v4184_v63 = vld [vmem:[#allocation5 + $0x798] sm:$0xf0] }
  0xe6   :  { %2055 = vmatpush.bf16.msra.mxu2 %v3563_v54  ;;  %v3499_v54 = vor.u32 %v4825_v41, %v3496_v42  ;;  %v5005_v29 = vld [vmem:[#allocation5 + $0x7cc] sm:$0xf]  ;;  %v4091_v36 = vor.u32 %v4973_v26, %v4088_v27  ;;  %v3944_v42 = vld [vmem:[#allocation5 + $0x5b8] sm:$0xf0] }
  0xe7   :  { %2069 = vmatpush.bf16.msra.mxu3 %v3691_v59  ;;  %v3627_v59 = vor.u32 %v4857_v46, %v3624_v48  ;;  %v5413_v14 = vpop.f32.mrf.mxu2  ;;  %v4905_v37 = vld [vmem:[#allocation5 + $0x4ac] sm:$0xf]  ;;  %v4072_v48 = vld [vmem:[#allocation5 + $0x6b8] sm:$0xf0] }
  0xe8   :  { %2028 = vmatpush.bf16.msra.mxu0 %v3291_v2  ;;  %v4945_v2 = vld [vmem:[#allocation5 + $0x5ec] sm:$0xf]  ;;  %v3896_v27 = vld [vmem:[#allocation5 + $0x558] sm:$0xf0] }
  0xe9   :  { %2042 = vmatpush.bf16.msra.mxu1 %v3419_v4  ;;  %v3227_v4 = vor.u32 %v4757_v51, %v3224_v52  ;;  %v4937_v40 = vld [vmem:[#allocation5 + $0x5ac] sm:$0xf]  ;;  %v4200_v51 = vld [vmem:[#allocation5 + $0x7b8] sm:$0xf0] }
  0xea   :  { %2056 = vmatpush.bf16.msra.mxu2 %v3547_v5  ;;  %v3976_v5 = vld [vmem:[#allocation5 + $0x5f8] sm:$0xf0]  ;;  %v4969_v46 = vld [vmem:[#allocation5 + $0x6ac] sm:$0xf] }
  0xeb   :  { %2070 = vmatpush.bf16.msra.mxu3 %v3675_v11  ;;  %v3483_v11 = vor.u32 %v4821_v57, %v3480_v60  ;;  %v5417_v28 = vpop.f32.mrf.mxu0  ;;  %v4901_v55 = vld [vmem:[#allocation5 + $0x48c] sm:$0xf]  ;;  %v3928_v60 = vld [vmem:[#allocation5 + $0x598] sm:$0xf0] }
  0xec   :  { %2029 = vmatpush.bf16.msra.mxu0 %v3275_v18  ;;  %v5415_v18 = vpop.f32.mrf.mxu3  ;;  %v4965_v61 = vld [vmem:[#allocation5 + $0x68c] sm:$0xf] }
  0xed   :  { %2043 = vmatpush.bf16.msra.mxu1 %v3403_v19  ;;  %v3979_v19 = vor.u32 %v4945_v2, %v3976_v5  ;;  %v4897_v5 = vld [vmem:[#allocation5 + $0x46c] sm:$0xf] }
  0xee   :  { %2057 = vmatpush.bf16.msra.mxu2 %v3531_v20  ;;  %v4107_v20 = vor.u32 %v4977_v6, %v4104_v7  ;;  %v3784_v6 = vld [vmem:[#allocation5 + $0x478] sm:$0xf0]  ;;  %v4929_v7 = vld [vmem:[#allocation5 + $0x56c] sm:$0xf] }
  0xef   :  { %2071 = vmatpush.bf16.msra.mxu3 %v3659_v24  ;;  %v4235_v24 = vor.u32 %v5009_v12, %v4232_v13  ;;  %v5425_v57 = vpop.f32.mrf.mxu2  ;;  %v3912_v12 = vld [vmem:[#allocation5 + $0x578] sm:$0xf0]  ;;  %v4961_v13 = vld [vmem:[#allocation5 + $0x66c] sm:$0xf] }
  0xf0   :  { %2030 = vmatpush.bf16.msra.mxu0 %v3259_v31  ;;  %v4216_v31 = vld [vmem:[#allocation5 + $0x7d8] sm:$0xf0]  ;;  %v4893_v23 = vld [vmem:[#allocation5 + $0x44c] sm:$0xf] }
  0xf1   :  { %2044 = vmatpush.bf16.msra.mxu1 %v3387_v33  ;;  %v5419_v33 = vpop.f32.mrf.mxu1  ;;  %v4219_v41 = vor.u32 %v5005_v29, %v4216_v31  ;;  %v4925_v25 = vld [vmem:[#allocation5 + $0x54c] sm:$0xf]  ;;  %v4024_v31 = vld [vmem:[#allocation5 + $0x658] sm:$0xf0] }
  0xf2   :  { %2058 = vmatpush.bf16.msra.mxu2 %v3515_v34  ;;  %v3835_v34 = vor.u32 %v4909_v21, %v3832_v22  ;;  %v3915_v21 = vor.u32 %v4929_v7, %v3912_v12  ;;  %v4957_v29 = vld [vmem:[#allocation5 + $0x64c] sm:$0xf] }
  0xf3   :  { %2072 = vmatpush.bf16.msra.mxu3 %v3643_v38  ;;  %v3816_v38 = vld [vmem:[#allocation5 + $0x4b8] sm:$0xf0]  ;;  %v5429_v0 = vpop.f32.mrf.mxu0  ;;  %v4949_v7 = vld [vmem:[#allocation5 + $0x60c] sm:$0xf] }
  0xf4   :  { %2031 = vmatpush.bf16.msra.mxu0 %v3243_v50  ;;  %v5001_v50 = vld [vmem:[#allocation5 + $0x7ac] sm:$0xf]  ;;  %v3819_v52 = vor.u32 %v4905_v37, %v3816_v38  ;;  %v5427_v62 = vpop.f32.mrf.mxu3 }
  0xf5   :  { %2045 = vmatpush.bf16.msra.mxu1 %v3371_v53  ;;  %v3947_v53 = vor.u32 %v4937_v40, %v3944_v42  ;;  %v4027_v42 = vor.u32 %v4957_v29, %v4024_v31  ;;  %v4981_v12 = vld [vmem:[#allocation5 + $0x70c] sm:$0xf] }
  0xf6   :  { %2059 = vmatpush.bf16.msra.mxu2 %v3499_v54  ;;  %v4075_v54 = vor.u32 %v4969_v46, %v4072_v48  ;;  %v4889_v48 = vld [vmem:[#allocation5 + $0x42c] sm:$0xf] }
  0xf7   :  { %2073 = vmatpush.bf16.msra.mxu3 %v3627_v59  ;;  %v4203_v59 = vor.u32 %v5001_v50, %v4200_v51  ;;  %v5435_v37 = vpop.f32.mrf.mxu2  ;;  %v3752_v50 = vld [vmem:[#allocation5 + $0x438] sm:$0xf0]  ;;  %v4921_v51 = vld [vmem:[#allocation5 + $0x52c] sm:$0xf] }
  0xf8   :  { %2032 = vmatpush.bf16.msra.mxu0 %v3227_v4 }
  0xf9   :  { %2046 = vmatpush.bf16.msra.mxu1 %v3355_v8  ;;  %v5431_v8 = vpop.f32.mrf.mxu1 }
  0xfa   :  { %2060 = vmatpush.bf16.msra.mxu2 %v3483_v11 }
  0xfb   :  { %2074 = vmatpush.bf16.msra.mxu3 %v3611_v15  ;;  %2033 = vmatmul.bf16.vlgmr.msra.gmra.mxu0 %v5361_v58  ;;  %v4056_v58 = vld [vmem:[#allocation5 + $0x698] sm:$0xf0]  ;;  %v1810_v46 = vpop.f32.mrf.mxu0 }
  0xfc   :  { %2081 = vmatpush.bf16.msrb.mxu0 %v3851_v16  ;;  %2047 = vmatmul.bf16.vlgmr.msra.gmra.mxu1 %v5367_v10  ;;  %v3803_v10 = vor.u32 %v4901_v55, %v3800_v56  ;;  %v4059_v4 = vor.u32 %v4965_v61, %v4056_v58  ;;  %v4040_v15 = vld [vmem:[#allocation5 + $0x678] sm:$0xf0]  ;;  %v4993_v16 = vld [vmem:[#allocation5 + $0x76c] sm:$0xf]  ;;  %v5437_v40 = vpop.f32.mrf.mxu3  ;;  %v3755_v58 = vor.u32 %v4889_v48, %v3752_v50  ;;  %v4462_v48 = vld [vmem:[#allocation8 + $0x1c0] sm:$0xf] }
  0xfd   :  { %2095 = vmatpush.bf16.msrb.mxu1 %v3979_v19  ;;  %2061 = vmatmul.bf16.vlgmr.msra.gmra.mxu2 %v5363_v1  ;;  %v4933_v1 = vld [vmem:[#allocation5 + $0x58c] sm:$0xf]  ;;  %v4168_v19 = vld [vmem:[#allocation5 + $0x778] sm:$0xf0]  ;;  %v4043_v22 = vor.u32 %v4961_v13, %v4040_v15  ;;  %v4350_v15 = vld [vmem:[#allocation8 + $0xe0] sm:$0xf] }
  0xfe   :  { %2109 = vmatpush.bf16.msrb.mxu2 %v4107_v20  ;;  %2075 = vmatmul.bf16.vlgmr.msra.gmra.mxu3 %v5369_v17  ;;  %v4997_v17 = vld [vmem:[#allocation5 + $0x78c] sm:$0xf]  ;;  %v3931_v2 = vor.u32 %v4933_v1, %v3928_v60  ;;  %v3787_v20 = vor.u32 %v4897_v5, %v3784_v6  ;;  %v4171_v26 = vor.u32 %v4993_v16, %v4168_v19  ;;  %v4008_v55 = vld [vmem:[#allocation5 + $0x638] sm:$0xf0]  ;;  %v5042_v16 = vld [vmem:[#allocation8 + $0xec] sm:$0xf0] }
  0xff   :  { %2123 = vmatpush.bf16.msrb.mxu3 %v4235_v24  ;;  %v4187_v11 = vor.u32 %v4997_v17, %v4184_v63  ;;  %v3768_v24 = vld [vmem:[#allocation5 + $0x458] sm:$0xf0]  ;;  %v4985_v1 = vld [vmem:[#allocation5 + $0x72c] sm:$0xf]  ;;  %v5070_v50 = vld [vmem:[#allocation8 + $0x1cc] sm:$0xf0] }
 0x100   :  { %2082 = vmatpush.bf16.msrb.mxu0 %v3835_v34  ;;  %v4989_v34 = vld [vmem:[#allocation5 + $0x74c] sm:$0xf]  ;;  %v3771_v38 = vor.u32 %v4893_v23, %v3768_v24  ;;  %v3864_v5 = vld [vmem:[#allocation5 + $0x518] sm:$0xf0]  ;;  %v5074_v23 = vld [vmem:[#allocation8 + $0x1ec] sm:$0xf0]  ;;  %v1838_v24 = vpop.f32.mrf.mxu2 }
 0x101   :  { %2096 = vmatpush.bf16.msrb.mxu1 %v3963_v35  ;;  %v4152_v35 = vld [vmem:[#allocation5 + $0x758] sm:$0xf0]  ;;  %v1824_v56 = vpop.f32.mrf.mxu1  ;;  %v4885_v17 = vld [vmem:[#allocation5 + $0x40c] sm:$0xf] }
 0x102   :  { %2110 = vmatpush.bf16.msrb.mxu2 %v4091_v36  ;;  %v5433_v36 = vld [vmem:[#allocation7] sm:$0xf]  ;;  %v4120_v13 = vld [vmem:[#allocation5 + $0x718] sm:$0xf0] }
 0x103   :  { %2124 = vmatpush.bf16.msrb.mxu3 %v4219_v41  ;;  %v3899_v41 = vor.u32 %v4925_v25, %v3896_v27  ;;  %v361_v60 = vperm.slane %v5433_v36, 0  ;;  %v362_v61 = vperm.slane %v5433_v36, 1  ;;  %v4123_v31 = vor.u32 %v4981_v12, %v4120_v13  ;;  %v5062_v12 = vld [vmem:[#allocation8 + $0x18c] sm:$0xf0] }
 0x104   :  { %2083 = vmatpush.bf16.msrb.mxu0 %v3819_v52  ;;  %v4155_v52 = vor.u32 %v4989_v34, %v4152_v35  ;;  %v1852_v29 = vpop.f32.mrf.mxu3  ;;  %v4351_v34 = vor.u32 %v5042_v16, %v4350_v15 }
 0x105   :  { %2097 = vmatpush.bf16.msrb.mxu1 %v3947_v53  ;;  %v3880_v53 = vld [vmem:[#allocation5 + $0x538] sm:$0xf0]  ;;  %v1699_v19 = vadd.f32 %v5401_v3, %v361_v60  ;;  %v1811_v25 = vadd.f32 %v1810_v46, %v362_v61  ;;  %v5038_v3 = vld [vmem:[#allocation8 + $0xcc] sm:$0xf0] }
 0x106   :  { %2111 = vmatpush.bf16.msrb.mxu2 %v4075_v54  ;;  %v4953_v54 = vld [vmem:[#allocation5 + $0x62c] sm:$0xf]  ;;  %v3883_v63 = vor.u32 %v4921_v51, %v3880_v53  ;;  %v4606_v53 = vld [vmem:[#allocation8 + $0x2e0] sm:$0xf] }
 0x107   :  { %2125 = vmatpush.bf16.msrb.mxu3 %v4203_v59  ;;  %v4136_v59 = vld [vmem:[#allocation5 + $0x738] sm:$0xf0]  ;;  %v1825_v51 = vadd.f32 %v1824_v56, %v1811_v25  ;;  %v4446_v56 = vld [vmem:[#allocation8 + $0x1a0] sm:$0xf] }
 0x108   :  { %2084 = vmatpush.bf16.msrb.mxu0 %v3803_v10  ;;  %v4011_v10 = vor.u32 %v4953_v54, %v4008_v55  ;;  %v4139_v6 = vor.u32 %v4985_v1, %v4136_v59  ;;  %v5106_v54 = vld [vmem:[#allocation8 + $0x2ec] sm:$0xf0]  ;;  %v4463_v1 = vor.u32 %v5070_v50, %v4462_v48 }
 0x109   :  { %2098 = vmatpush.bf16.msrb.mxu1 %v3931_v2  ;;  %v3736_v2 = vld [vmem:[#allocation5 + $0x418] sm:$0xf0]  ;;  %v1826_v46 = vpop.f32.mrf.mxu1  ;;  %v5034_v59 = vld [vmem:[#allocation8 + $0xac] sm:$0xf0] }
 0x10a   :  { %2112 = vmatpush.bf16.msrb.mxu2 %v4059_v4  ;;  %v4917_v4 = vld [vmem:[#allocation5 + $0x50c] sm:$0xf] }
 0x10b   :  { %2126 = vmatpush.bf16.msrb.mxu3 %v4187_v11  ;;  %v3992_v11 = vld [vmem:[#allocation5 + $0x618] sm:$0xf0] }
 0x10c   :  { %2085 = vmatpush.bf16.msrb.mxu0 %v3787_v20  ;;  %v1701_v20 = vadd.f32 %v5409_v45, %v361_v60  ;;  %v3995_v27 = vor.u32 %v4949_v7, %v3992_v11  ;;  %v1713_v45 = vadd.f32 %v5403_v9, %v1699_v19  ;;  %v4318_v9 = vld [vmem:[#allocation8 + $0xa0] sm:$0xf] }
 0x10d   :  { %2099 = vmatpush.bf16.msrb.mxu1 %v3915_v21  ;;  %v3739_v21 = vor.u32 %v4885_v17, %v3736_v2  ;;  %v5066_v17 = vld [vmem:[#allocation8 + $0x1ac] sm:$0xf0]  ;;  %v4430_v11 = vld [vmem:[#allocation8 + $0x180] sm:$0xf] }
 0x10e   :  { %2113 = vmatpush.bf16.msrb.mxu2 %v4043_v22  ;;  %v4478_v22 = vld [vmem:[#allocation8 + $0x1e0] sm:$0xf]  ;;  %v1727_v60 = vadd.f32 %v5405_v30, %v1713_v45  ;;  %v5102_v2 = vld [vmem:[#allocation8 + $0x2cc] sm:$0xf0]  ;;  %v4447_v30 = vor.u32 %v5066_v17, %v4446_v56 }
 0x10f   :  { %2127 = vmatpush.bf16.msrb.mxu3 %v4171_v26  ;;  %v3867_v26 = vor.u32 %v4917_v4, %v3864_v5  ;;  %v4479_v35 = vor.u32 %v5074_v23, %v4478_v22  ;;  %v1854_v5 = vpop.f32.mrf.mxu3  ;;  %v4574_v19 = vld [vmem:[#allocation8 + $0x2a0] sm:$0xf]  ;;  %v4431_v22 = vor.u32 %v5062_v12, %v4430_v11  ;;  %v5022_v45 = vld [vmem:[#allocation8 + $0x4c] sm:$0xf0]  ;;  %v5040_v11 = vld [vmem:[#allocation8 + $0xe4] sm:$0xf] }
 0x110   :  { %2086 = vmatpush.bf16.msrb.mxu0 %v3771_v38  ;;  %v1812_v38 = vpop.f32.mrf.mxu0  ;;  %v4286_v23 = vld [vmem:[#allocation8 + $0x60] sm:$0xf]  ;;  %v4352_v12 = vld [vmem:[#allocation8 + $0xf0] sm:$0xf0] }
 0x111   :  { %2100 = vmatpush.bf16.msrb.mxu1 %v3899_v41  ;;  %v4334_v41 = vld [vmem:[#allocation8 + $0xc0] sm:$0xf]  ;;  %v1813_v55 = vadd.f32 %v1812_v38, %v362_v61  ;;  %v1840_v61 = vpop.f32.mrf.mxu2 }
 0x112   :  { %2114 = vmatpush.bf16.msrb.mxu2 %v4027_v42  ;;  %v1715_v42 = vadd.f32 %v5411_v49, %v1701_v20  ;;  %v4607_v49 = vor.u32 %v5106_v54, %v4606_v53  ;;  %v5098_v20 = vld [vmem:[#allocation8 + $0x2ac] sm:$0xf0]  ;;  %v4382_v17 = vld [vmem:[#allocation8 + $0x120] sm:$0xf] }
 0x113   :  { %2128 = vmatpush.bf16.msrb.mxu3 %v4155_v52  ;;  %v4335_v52 = vor.u32 %v5038_v3, %v4334_v41  ;;  %v1827_v4 = vadd.f32 %v1826_v46, %v1813_v55  ;;  %v4575_v25 = vor.u32 %v5098_v20, %v4574_v19  ;;  %v4270_v3 = vld [vmem:[#allocation8 + $0x40] sm:$0xf]  ;;  %v5054_v46 = vld [vmem:[#allocation8 + $0x14c] sm:$0xf0] }
 0x114   :  { %2087 = vmatpush.bf16.msrb.mxu0 %v3755_v58  ;;  %v1729_v58 = vadd.f32 %v5413_v14, %v1715_v42  ;;  %v4302_v14 = vld [vmem:[#allocation8 + $0x80] sm:$0xf]  ;;  %v4271_v55 = vor.u32 %v5022_v45, %v4270_v3  ;;  %v5078_v3 = vld [vmem:[#allocation8 + $0x20c] sm:$0xf0] }
 0x115   :  { %2101 = vmatpush.bf16.msrb.mxu1 %v3883_v63  ;;  %v1839_v63 = vadd.f32 %v1838_v24, %v1825_v51  ;;  %v5026_v24 = vld [vmem:[#allocation8 + $0x6c] sm:$0xf0] }
 0x116   :  { %2115 = vmatpush.bf16.msrb.mxu2 %v4011_v10  ;;  %v4590_v10 = vld [vmem:[#allocation8 + $0x2c0] sm:$0xf]  ;;  %v1743_v7 = vadd.f32 %v5415_v18, %v1729_v58 }
 0x117   :  { %2129 = vmatpush.bf16.msrb.mxu3 %v4139_v6  ;;  %v5030_v6 = vld [vmem:[#allocation8 + $0x8c] sm:$0xf0] }
 0x118   :  { %2088 = vmatpush.bf16.msrb.mxu0 %v3739_v21  ;;  %v1866_v13 = vpop.f32.mrf.mxu0  ;;  %v4303_v15 = vor.u32 %v5030_v6, %v4302_v14  ;;  %v1841_v21 = vadd.f32 %v1840_v61, %v1827_v4  ;;  %v1757_v18 = vadd.f32 %v5429_v0, %v1743_v7  ;;  %v4398_v0 = vld [vmem:[#allocation8 + $0x140] sm:$0xf]  ;;  %v5014_v14 = vld [vmem:[#allocation8 + $0xc] sm:$0xf0] }
 0x119   :  { %2102 = vmatpush.bf16.msrb.mxu1 %v3867_v26  ;;  %v1880_v16 = vpop.f32.mrf.mxu1  ;;  %v4414_v26 = vld [vmem:[#allocation8 + $0x160] sm:$0xf]  ;;  %v5046_v7 = vld [vmem:[#allocation8 + $0x10c] sm:$0xf0] }
 0x11a   :  { %2116 = vmatpush.bf16.msrb.mxu2 %v3995_v27  ;;  %v5058_v27 = vld [vmem:[#allocation8 + $0x16c] sm:$0xf0]  ;;  %v1855_v38 = vadd.f32 %v1854_v5, %v1841_v21  ;;  %v4238_v5 = vld [vmem:[#allocation8] sm:$0xf] }
 0x11b   :  { %2130 = vmatpush.bf16.msrb.mxu3 %v4123_v31  ;;  %2089 = vmatmul.bf16.vlgmr.msrb.gmra.mxu0 %v5373_v39  ;;  %v4319_v39 = vor.u32 %v5034_v59, %v4318_v9  ;;  %v4287_v31 = vor.u32 %v5026_v24, %v4286_v23  ;;  %v4415_v41 = vor.u32 %v5058_v27, %v4414_v26  ;;  %v5090_v9 = vld [vmem:[#allocation8 + $0x26c] sm:$0xf0]  ;;  %v4366_v6 = vld [vmem:[#allocation8 + $0x100] sm:$0xf]  ;;  %v5036_v26 = vld [vmem:[#allocation8 + $0xc4] sm:$0xf] }
 0x11c   :  { %2927 = vmatpush.bf16.msra.mxu0 %v4351_v34  ;;  %2103 = vmatmul.bf16.vlgmr.msrb.gmra.mxu1 %v5377_v44  ;;  %v4591_v44 = vor.u32 %v5102_v2, %v4590_v10  ;;  %v4558_v34 = vld [vmem:[#allocation8 + $0x280] sm:$0xf]  ;;  %v5086_v2 = vld [vmem:[#allocation8 + $0x24c] sm:$0xf0]  ;;  %v4239_v20 = vor.u32 %v5014_v14, %v4238_v5  ;;  %v4367_v24 = vor.u32 %v5046_v7, %v4366_v6  ;;  %v4336_v27 = vld [vmem:[#allocation8 + $0xd0] sm:$0xf0] }
 0x11d   :  { %2941 = vmatpush.bf16.msra.mxu1 %v4479_v35  ;;  %2117 = vmatmul.bf16.vlgmr.msrb.gmra.mxu2 %v5375_v43  ;;  %v1741_v43 = vadd.f32 %v5407_v32, %v1727_v60  ;;  %v5094_v35 = vld [vmem:[#allocation8 + $0x28c] sm:$0xf0]  ;;  %v4254_v60 = vld [vmem:[#allocation8 + $0x20] sm:$0xf]  ;;  %v5092_v5 = vld [vmem:[#allocation8 + $0x284] sm:$0xf] }
 0x11e   :  { %2131 = vmatmul.bf16.vlgmr.msrb.gmra.mxu3 %v5379_v47  ;;  %2955 = vmatpush.bf16.msra.mxu2 %v4607_v49  ;;  %v1853_v47 = vadd.f32 %v1852_v29, %v1839_v63  ;;  %v4559_v42 = vor.u32 %v5094_v35, %v4558_v34  ;;  %v4399_v49 = vor.u32 %v5054_v46, %v4398_v0  ;;  %v5050_v63 = vld [vmem:[#allocation8 + $0x12c] sm:$0xf0]  ;;  %v4526_v10 = vld [vmem:[#allocation8 + $0x240] sm:$0xf]  ;;  %v5068_v34 = vld [vmem:[#allocation8 + $0x1c4] sm:$0xf] }
 0x11f   :  { %v1755_v32 = vadd.f32 %v5417_v28, %v1741_v43  ;;  %v1771_v28 = vadd.f32 %v5431_v8, %v1757_v18  ;;  %v4510_v21 = vld [vmem:[#allocation8 + $0x220] sm:$0xf]  ;;  %v4464_v35 = vld [vmem:[#allocation8 + $0x1d0] sm:$0xf0]  ;;  %v5104_v46 = vld [vmem:[#allocation8 + $0x2e4] sm:$0xf] }
 0x120   :  { %2928 = vmatpush.bf16.msra.mxu0 %v4335_v52  ;;  %v1867_v29 = vadd.f32 %v1866_v13, %v1853_v47  ;;  %v1894_v50 = vpop.f32.mrf.mxu2  ;;  %v1868_v52 = vpop.f32.mrf.mxu0  ;;  %v4320_v0 = vld [vmem:[#allocation8 + $0xb0] sm:$0xf0]  ;;  %v5052_v7 = vld [vmem:[#allocation8 + $0x144] sm:$0xf] }
 0x121   :  { %2942 = vmatpush.bf16.msra.mxu1 %v4463_v1  ;;  %v1769_v48 = vadd.f32 %v5419_v33, %v1755_v32  ;;  %v1908_v53 = vpop.f32.mrf.mxu3  ;;  %v1785_v54 = vadd.f32 %v5435_v37, %v1771_v28  ;;  %v4542_v1 = vld [vmem:[#allocation8 + $0x260] sm:$0xf]  ;;  %v1869_v59 = vadd.f32 %v1868_v52, %v1855_v38  ;;  %v5018_v33 = vld [vmem:[#allocation8 + $0x2c] sm:$0xf0]  ;;  %v1882_v56 = vpop.f32.mrf.mxu1  ;;  %v5064_v52 = vld [vmem:[#allocation8 + $0x1a4] sm:$0xf] }
 0x122   :  { %2956 = vmatpush.bf16.msra.mxu2 %v4591_v44  ;;  %v1881_v51 = vadd.f32 %v1880_v16, %v1867_v29  ;;  %v4543_v58 = vor.u32 %v5090_v9, %v4542_v1  ;;  %v4255_v37 = vor.u32 %v5018_v33, %v4254_v60  ;;  %v4527_v44 = vor.u32 %v5086_v2, %v4526_v10  ;;  %v4480_v16 = vld [vmem:[#allocation8 + $0x1f0] sm:$0xf0]  ;;  %v5100_v1 = vld [vmem:[#allocation8 + $0x2c4] sm:$0xf] }
 0x123   :  { %v1783_v8 = vadd.f32 %v5425_v57, %v1769_v48  ;;  %v1799_v61 = vadd.f32 %v5437_v40, %v1785_v54  ;;  %v1883_v4 = vadd.f32 %v1882_v56, %v1869_v59  ;;  %v5032_v48 = vld [vmem:[#allocation8 + $0xa4] sm:$0xf]  ;;  %v4592_v9 = vld [vmem:[#allocation8 + $0x2d0] sm:$0xf0] }
 0x124   :  { %2929 = vmatpush.bf16.msra.mxu0 %v4319_v39  ;;  %v1895_v39 = vadd.f32 %v1894_v50, %v1881_v51  ;;  %v4467_v50 = vor.u32 %v5068_v34, %v4464_v35  ;;  %v4608_v51 = vld [vmem:[#allocation8 + $0x2f0] sm:$0xf0]  ;;  %v4595_v33 = vor.u32 %v5100_v1, %v4592_v9  ;;  %v5056_v2 = vld [vmem:[#allocation8 + $0x164] sm:$0xf]  ;;  %v4358_v35 = vld [vmem:[#allocation8 + $0xe8] sm:$0xf] }
 0x125   :  { %2943 = vmatpush.bf16.msra.mxu1 %v4447_v30  ;;  %v4383_v30 = vor.u32 %v5050_v63, %v4382_v17  ;;  %v1797_v57 = vadd.f32 %v5427_v62, %v1783_v8  ;;  %v2141_v19 = vmax.f32 %v1799_v61, 0.0  ;;  %v4611_v54 = vor.u32 %v5104_v46, %v4608_v51  ;;  %v4304_v60 = vld [vmem:[#allocation8 + $0x90] sm:$0xf0]  ;;  %v5096_v17 = vld [vmem:[#allocation8 + $0x2a4] sm:$0xf] }
 0x126   :  { %2957 = vmatpush.bf16.msra.mxu2 %v4575_v25  ;;  %v1909_v47 = vadd.f32 %v1908_v53, %v1895_v39  ;;  %v4355_v25 = vor.u32 %v5040_v11, %v4352_v12  ;;  %v4448_v53 = vld [vmem:[#allocation8 + $0x1b0] sm:$0xf0]  ;;  %v5024_v61 = vld [vmem:[#allocation8 + $0x64] sm:$0xf]  ;;  %v5039_v1 = vld [vmem:[#allocation8 + $0xd4] sm:$0xf0] }
 0x127   :  { %v2137_v32 = vmax.f32 %v1797_v57, 0.0  ;;  %v4451_v59 = vor.u32 %v5064_v52, %v4448_v53  ;;  %v4432_v8 = vld [vmem:[#allocation8 + $0x190] sm:$0xf0]  ;;  %v4470_v9 = vld [vmem:[#allocation8 + $0x1c8] sm:$0xf] }
 0x128   :  { %2930 = vmatpush.bf16.msra.mxu0 %v4303_v15  ;;  %v1896_v43 = vpop.f32.mrf.mxu2  ;;  %v5072_v15 = vld [vmem:[#allocation8 + $0x1e4] sm:$0xf]  ;;  %v2138_v29 = vmax.f32 %v1909_v47, 0.0  ;;  %v4576_v63 = vld [vmem:[#allocation8 + $0x2b0] sm:$0xf0] }
 0x129   :  { %2944 = vmatpush.bf16.msra.mxu1 %v4431_v22  ;;  %v1897_v13 = vadd.f32 %v1896_v43, %v1883_v4  ;;  %v1910_v40 = vpop.f32.mrf.mxu3  ;;  %v5082_v22 = vld [vmem:[#allocation8 + $0x22c] sm:$0xf0]  ;;  %v4483_v18 = vor.u32 %v5072_v15, %v4480_v16  ;;  %v5461_v38 = vpack.c.bf16 %v2141_v19, %v2137_v32  ;;  %v4579_v10 = vor.u32 %v5096_v17, %v4576_v63  ;;  %v4416_v4 = vld [vmem:[#allocation8 + $0x170] sm:$0xf0]  ;;  %v5088_v47 = vld [vmem:[#allocation8 + $0x264] sm:$0xf] }
 0x12a   :  { %2958 = vmatpush.bf16.msra.mxu2 %v4559_v42  ;;  %v4511_v62 = vor.u32 %v5082_v22, %v4510_v21  ;;  %v4339_v42 = vor.u32 %v5036_v26, %v4336_v27  ;;  %v4560_v14 = vld [vmem:[#allocation8 + $0x290] sm:$0xf0]  ;;  %v4419_v6 = vor.u32 %v5056_v2, %v4416_v4  ;;  %v5016_v15 = vld [vmem:[#allocation8 + $0x24] sm:$0xf]  ;;  %v4454_v2 = vld [vmem:[#allocation8 + $0x1a8] sm:$0xf] }
 0x12b   :  { %v1911_v23 = vadd.f32 %v1910_v40, %v1897_v13  ;;  %v4272_v57 = vld [vmem:[#allocation8 + $0x50] sm:$0xf0]  ;;  %v4563_v43 = vor.u32 %v5092_v5, %v4560_v14  ;;  %v5048_v21 = vld [vmem:[#allocation8 + $0x124] sm:$0xf]  ;;  %v5067_v4 = vld [vmem:[#allocation8 + $0x1b4] sm:$0xf0] }
 0x12c   :  { %2931 = vmatpush.bf16.msra.mxu0 %v4287_v31  ;;  %v4400_v11 = vld [vmem:[#allocation8 + $0x150] sm:$0xf0]  ;;  %v5012_v26 = vld [vmem:[#allocation8 + $0x4] sm:$0xf] }
 0x12d   :  { %2945 = vmatpush.bf16.msra.mxu1 %v4415_v41  ;;  %v2142_v31 = vmax.f32 %v1911_v23, 0.0  ;;  %v4494_v41 = vld [vmem:[#allocation8 + $0x200] sm:$0xf]  ;;  %v4544_v13 = vld [vmem:[#allocation8 + $0x270] sm:$0xf0]  ;;  %v4403_v40 = vor.u32 %v5052_v7, %v4400_v11 }
 0x12e   :  { %2959 = vmatpush.bf16.msra.mxu2 %v4543_v58  ;;  %v4495_v28 = vor.u32 %v5078_v3, %v4494_v41  ;;  %v5060_v58 = vld [vmem:[#allocation8 + $0x184] sm:$0xf]  ;;  %v4256_v16 = vld [vmem:[#allocation8 + $0x30] sm:$0xf0]  ;;  %v4547_v19 = vor.u32 %v5088_v47, %v4544_v13  ;;  %v5043_v41 = vld [vmem:[#allocation8 + $0xf4] sm:$0xf0] }
 0x12f   :  { %v5463_v45 = vpack.c.bf16 %v2142_v31, %v2138_v29  ;;  %v4435_v39 = vor.u32 %v5060_v58, %v4432_v8  ;;  %v4384_v22 = vld [vmem:[#allocation8 + $0x130] sm:$0xf0]  ;;  %v5044_v29 = vld [vmem:[#allocation8 + $0x104] sm:$0xf]  ;;  %v4486_v3 = vld [vmem:[#allocation8 + $0x1e8] sm:$0xf] }
 0x130   :  { %2932 = vmatpush.bf16.msra.mxu0 %v4271_v55  ;;  %v4323_v55 = vor.u32 %v5032_v48, %v4320_v0  ;;  %v4528_v32 = vld [vmem:[#allocation8 + $0x250] sm:$0xf0]  ;;  %v4359_v0 = vor.u32 %v5043_v41, %v4358_v35  ;;  %v4310_v7 = vld [vmem:[#allocation8 + $0x88] sm:$0xf]  ;;  %v5031_v11 = vld [vmem:[#allocation8 + $0x94] sm:$0xf0] }
 0x131   :  { %2946 = vmatpush.bf16.msra.mxu1 %v4399_v49  ;;  %v5028_v49 = vld [vmem:[#allocation8 + $0x84] sm:$0xf]  ;;  %v4240_v27 = vld [vmem:[#allocation8 + $0x10] sm:$0xf0]  ;;  %v4438_v13 = vld [vmem:[#allocation8 + $0x188] sm:$0xf] }
 0x132   :  { %2960 = vmatpush.bf16.msra.mxu2 %v4527_v44  ;;  %v4307_v56 = vor.u32 %v5028_v49, %v4304_v60  ;;  %v5020_v44 = vld [vmem:[#allocation8 + $0x44] sm:$0xf]  ;;  %v4368_v34 = vld [vmem:[#allocation8 + $0x110] sm:$0xf0]  ;;  %v4243_v48 = vor.u32 %v5012_v26, %v4240_v27  ;;  %v4422_v26 = vld [vmem:[#allocation8 + $0x168] sm:$0xf] }
 0x133   :  { %v4275_v12 = vor.u32 %v5020_v44, %v4272_v57  ;;  %v5076_v60 = vld [vmem:[#allocation8 + $0x204] sm:$0xf]  ;;  %v5134_v44 = vld [vmem:[#allocation8 + $0x3cc] sm:$0xf0]  ;;  %v5059_v27 = vld [vmem:[#allocation8 + $0x174] sm:$0xf0] }
 0x134   :  { %2933 = vmatpush.bf16.msra.mxu0 %v4255_v37  ;;  %v4288_v37 = vld [vmem:[#allocation8 + $0x70] sm:$0xf0]  ;;  %v5126_v35 = vld [vmem:[#allocation8 + $0x38c] sm:$0xf0] }
 0x135   :  { %2947 = vmatpush.bf16.msra.mxu1 %v4383_v30  ;;  %v4291_v30 = vor.u32 %v5024_v61, %v4288_v37  ;;  %v5035_v61 = vld [vmem:[#allocation8 + $0xb4] sm:$0xf0]  ;;  %v4734_v37 = vld [vmem:[#allocation8 + $0x3e0] sm:$0xf] }
 0x136   :  { %2961 = vmatpush.bf16.msra.mxu2 %v4511_v62  ;;  %v5084_v62 = vld [vmem:[#allocation8 + $0x244] sm:$0xf] }
 0x137   :  { %v4531_v31 = vor.u32 %v5084_v62, %v4528_v32  ;;  %v5027_v62 = vld [vmem:[#allocation8 + $0x74] sm:$0xf0] }
 0x138   :  { %2934 = vmatpush.bf16.msra.mxu0 %v4239_v20  ;;  %v1922_v20 = vpop.f32.mrf.mxu0 }
 0x139   :  { %2948 = vmatpush.bf16.msra.mxu1 %v4367_v24  ;;  %v1936_v23 = vpop.f32.mrf.mxu1  ;;  %v363_v24 = vperm.slane %v5433_v36, 2  ;;  %v4512_v36 = vld [vmem:[#allocation8 + $0x230] sm:$0xf0] }
 0x13a   :  { %2962 = vmatpush.bf16.msra.mxu2 %v4495_v28  ;;  %v5080_v28 = vld [vmem:[#allocation8 + $0x224] sm:$0xf] }
 0x13b   :  { %2935 = vmatmul.bf16.vlgmr.msra.gmra.mxu0 %v5461_v38  ;;  %v4515_v51 = vor.u32 %v5080_v28, %v4512_v36  ;;  %v1923_v52 = vadd.f32 %v1922_v20, %v363_v24  ;;  %v4702_v20 = vld [vmem:[#allocation8 + $0x3a0] sm:$0xf]  ;;  %v4406_v36 = vld [vmem:[#allocation8 + $0x148] sm:$0xf] }
 0x13c   :  { %2983 = vmatpush.bf16.msrb.mxu0 %v4355_v25  ;;  %2949 = vmatmul.bf16.vlgmr.msra.gmra.mxu1 %v5463_v45  ;;  %v4259_v25 = vor.u32 %v5016_v15, %v4256_v16 }
 0x13d   :  { %2997 = vmatpush.bf16.msrb.mxu1 %v4483_v18  ;;  %v4387_v18 = vor.u32 %v5048_v21, %v4384_v22  ;;  %v1937_v63 = vadd.f32 %v1936_v23, %v1923_v52  ;;  %v5130_v21 = vld [vmem:[#allocation8 + $0x3ac] sm:$0xf0]  ;;  %v4670_v52 = vld [vmem:[#allocation8 + $0x360] sm:$0xf] }
 0x13e   :  { %3011 = vmatpush.bf16.msrb.mxu2 %v4611_v54  ;;  %v4703_v32 = vor.u32 %v5130_v21, %v4702_v20 }
 0x140   :  { %2984 = vmatpush.bf16.msrb.mxu0 %v4339_v42  ;;  %v5075_v42 = vld [vmem:[#allocation8 + $0x1f4] sm:$0xf0]  ;;  %v1950_v46 = vpop.f32.mrf.mxu2  ;;  %v1924_v49 = vpop.f32.mrf.mxu0 }
 0x141   :  { %2998 = vmatpush.bf16.msrb.mxu1 %v4467_v50  ;;  %v4371_v50 = vor.u32 %v5044_v29, %v4368_v34  ;;  %v4487_v53 = vor.u32 %v5075_v42, %v4486_v3  ;;  %v1964_v54 = vpop.f32.mrf.mxu3  ;;  %v1938_v8 = vpop.f32.mrf.mxu1  ;;  %v1925_v5 = vadd.f32 %v1924_v49, %v363_v24  ;;  %v1951_v57 = vadd.f32 %v1950_v46, %v1937_v63  ;;  %v4686_v34 = vld [vmem:[#allocation8 + $0x380] sm:$0xf]  ;;  %v4278_v42 = vld [vmem:[#allocation8 + $0x48] sm:$0xf]  ;;  %v5019_v49 = vld [vmem:[#allocation8 + $0x34] sm:$0xf0] }
 0x142   :  { %3012 = vmatpush.bf16.msrb.mxu2 %v4595_v33  ;;  %v4496_v33 = vld [vmem:[#allocation8 + $0x210] sm:$0xf0]  ;;  %v4423_v3 = vor.u32 %v5059_v27, %v4422_v26  ;;  %v4687_v28 = vor.u32 %v5126_v35, %v4686_v34  ;;  %v4246_v63 = vld [vmem:[#allocation8 + $0x8] sm:$0xf]  ;;  %v4622_v26 = vld [vmem:[#allocation8 + $0x300] sm:$0xf] }
 0x143   :  { %v4499_v17 = vor.u32 %v5076_v60, %v4496_v33  ;;  %v1939_v15 = vadd.f32 %v1938_v8, %v1925_v5  ;;  %v1965_v22 = vadd.f32 %v1964_v54, %v1951_v57  ;;  %v4390_v33 = vld [vmem:[#allocation8 + $0x128] sm:$0xf]  ;;  %v5073_v57 = vld [vmem:[#allocation8 + $0x1ec] sm:$0xf]  ;;  %v5110_v27 = vld [vmem:[#allocation8 + $0x30c] sm:$0xf0] }
 0x144   :  { %2985 = vmatpush.bf16.msrb.mxu0 %v4323_v55  ;;  %v4342_v55 = vld [vmem:[#allocation8 + $0xc8] sm:$0xf]  ;;  %v5033_v35 = vld [vmem:[#allocation8 + $0xac] sm:$0xf] }
 0x145   :  { %2999 = vmatpush.bf16.msrb.mxu1 %v4451_v59  ;;  %v5071_v59 = vld [vmem:[#allocation8 + $0x1d4] sm:$0xf0]  ;;  %v4343_v58 = vor.u32 %v5039_v1, %v4342_v55 }
 0x146   :  { %3013 = vmatpush.bf16.msrb.mxu2 %v4579_v10  ;;  %v5138_v10 = vld [vmem:[#allocation8 + $0x3ec] sm:$0xf0] }
 0x148   :  { %2986 = vmatpush.bf16.msrb.mxu0 %v4307_v56  ;;  %v4326_v56 = vld [vmem:[#allocation8 + $0xa8] sm:$0xf]  ;;  %v1952_v47 = vpop.f32.mrf.mxu2 }
 0x149   :  { %3000 = vmatpush.bf16.msrb.mxu1 %v4435_v39  ;;  %v4471_v39 = vor.u32 %v5071_v59, %v4470_v9  ;;  %v4327_v14 = vor.u32 %v5035_v61, %v4326_v56  ;;  %v1966_v16 = vpop.f32.mrf.mxu3  ;;  %v1953_v29 = vadd.f32 %v1952_v47, %v1939_v15  ;;  %v4262_v59 = vld [vmem:[#allocation8 + $0x28] sm:$0xf]  ;;  %v5118_v61 = vld [vmem:[#allocation8 + $0x34c] sm:$0xf0]  ;;  %v4638_v47 = vld [vmem:[#allocation8 + $0x320] sm:$0xf] }
 0x14a   :  { %3014 = vmatpush.bf16.msrb.mxu2 %v4563_v43  ;;  %v4455_v43 = vor.u32 %v5067_v4, %v4454_v2  ;;  %v5015_v2 = vld [vmem:[#allocation8 + $0x14] sm:$0xf0]  ;;  %v4374_v4 = vld [vmem:[#allocation8 + $0x108] sm:$0xf] }
 0x14c   :  { %2987 = vmatpush.bf16.msrb.mxu0 %v4291_v30  ;;  %v4735_v30 = vor.u32 %v5138_v10, %v4734_v37 }
 0x14d   :  { %3001 = vmatpush.bf16.msrb.mxu1 %v4419_v6  ;;  %v4718_v6 = vld [vmem:[#allocation8 + $0x3c0] sm:$0xf] }
 0x14e   :  { %3015 = vmatpush.bf16.msrb.mxu2 %v4547_v19  ;;  %2969 = vmatpush.bf16.msra.mxu3 %v4735_v30  ;;  %v4311_v19 = vor.u32 %v5031_v11, %v4310_v7  ;;  %v5047_v30 = vld [vmem:[#allocation8 + $0x114] sm:$0xf0]  ;;  %v4247_v11 = vor.u32 %v5015_v2, %v4246_v63  ;;  %v5025_v2 = vld [vmem:[#allocation8 + $0x6c] sm:$0xf] }
 0x150   :  { %2988 = vmatpush.bf16.msrb.mxu0 %v4275_v12  ;;  %v4719_v12 = vor.u32 %v5134_v44, %v4718_v6  ;;  %v4360_v6 = vld [vmem:[#allocation8 + $0xf8] sm:$0xf0] }
 0x151   :  { %3002 = vmatpush.bf16.msrb.mxu1 %v4403_v40  ;;  %v5063_v40 = vld [vmem:[#allocation8 + $0x194] sm:$0xf0] }
 0x152   :  { %3016 = vmatpush.bf16.msrb.mxu2 %v4531_v31  ;;  %2970 = vmatpush.bf16.msra.mxu3 %v4719_v12  ;;  %v4439_v24 = vor.u32 %v5063_v40, %v4438_v13  ;;  %v4375_v12 = vor.u32 %v5047_v30, %v4374_v4  ;;  %v5114_v13 = vld [vmem:[#allocation8 + $0x32c] sm:$0xf0]  ;;  %v4296_v4 = vld [vmem:[#allocation8 + $0x78] sm:$0xf0]  ;;  %v5057_v30 = vld [vmem:[#allocation8 + $0x16c] sm:$0xf] }
 0x153   :  { %v4639_v20 = vor.u32 %v5114_v13, %v4638_v47  ;;  %v5021_v47 = vld [vmem:[#allocation8 + $0x4c] sm:$0xf]  ;;  %v4280_v13 = vld [vmem:[#allocation8 + $0x58] sm:$0xf0] }
 0x154   :  { %2989 = vmatpush.bf16.msrb.mxu0 %v4259_v25  ;;  %v4294_v25 = vld [vmem:[#allocation8 + $0x68] sm:$0xf] }
 0x155   :  { %3003 = vmatpush.bf16.msrb.mxu1 %v4387_v18  ;;  %v4295_v31 = vor.u32 %v5027_v62, %v4294_v25  ;;  %v4472_v62 = vld [vmem:[#allocation8 + $0x1d8] sm:$0xf0] }
 0x156   :  { %3017 = vmatpush.bf16.msrb.mxu2 %v4515_v51  ;;  %2971 = vmatpush.bf16.msra.mxu3 %v4703_v32  ;;  %v4614_v32 = vld [vmem:[#allocation8 + $0x2e8] sm:$0xf] }
 0x158   :  { %2990 = vmatpush.bf16.msrb.mxu0 %v4243_v48  ;;  %v1978_v23 = vpop.f32.mrf.mxu0  ;;  %v5023_v48 = vld [vmem:[#allocation8 + $0x54] sm:$0xf0] }
 0x159   :  { %3004 = vmatpush.bf16.msrb.mxu1 %v4371_v50  ;;  %v1992_v18 = vpop.f32.mrf.mxu1  ;;  %v1979_v41 = vadd.f32 %v1978_v23, %v1965_v22  ;;  %v5055_v50 = vld [vmem:[#allocation8 + $0x154] sm:$0xf0]  ;;  %v4279_v51 = vor.u32 %v5023_v48, %v4278_v42  ;;  %v5037_v22 = vld [vmem:[#allocation8 + $0xcc] sm:$0xf]  ;;  %v4344_v23 = vld [vmem:[#allocation8 + $0xd8] sm:$0xf0] }
 0x15a   :  { %3018 = vmatpush.bf16.msrb.mxu2 %v4499_v17  ;;  %2972 = vmatpush.bf16.msra.mxu3 %v4687_v28  ;;  %v4407_v9 = vor.u32 %v5055_v50, %v4406_v36  ;;  %v4263_v17 = vor.u32 %v5019_v49, %v4262_v59  ;;  %v4347_v34 = vor.u32 %v5037_v22, %v4344_v23  ;;  %v4328_v28 = vld [vmem:[#allocation8 + $0xb8] sm:$0xf0]  ;;  %v5065_v36 = vld [vmem:[#allocation8 + $0x1ac] sm:$0xf]  ;;  %v4736_v50 = vld [vmem:[#allocation8 + $0x3f0] sm:$0xf0] }
 0x15b   :  { %2991 = vmatmul.bf16.vlgmr.msrb.gmra.mxu0 %v5461_v38  ;;  %v1993_v54 = vadd.f32 %v1992_v18, %v1979_v41  ;;  %v5107_v18 = vld [vmem:[#allocation8 + $0x2f4] sm:$0xf0]  ;;  %v4623_v41 = vor.u32 %v5110_v27, %v4622_v26  ;;  %v5029_v49 = vld [vmem:[#allocation8 + $0x8c] sm:$0xf]  ;;  %v5120_v22 = vld [vmem:[#allocation8 + $0x364] sm:$0xf] }
 0x15c   :  { %3039 = vmatpush.bf16.msra.mxu0 %v4359_v0  ;;  %3005 = vmatmul.bf16.vlgmr.msrb.gmra.mxu1 %v5463_v45  ;;  %v1967_v0 = vadd.f32 %v1966_v16, %v1953_v29  ;;  %v4615_v48 = vor.u32 %v5107_v18, %v4614_v32  ;;  %v4672_v23 = vld [vmem:[#allocation8 + $0x370] sm:$0xf0]  ;;  %v4264_v32 = vld [vmem:[#allocation8 + $0x38] sm:$0xf0]  ;;  %v5049_v18 = vld [vmem:[#allocation8 + $0x12c] sm:$0xf] }
 0x15d   :  { %3053 = vmatpush.bf16.msra.mxu1 %v4487_v53  ;;  %v5122_v53 = vld [vmem:[#allocation8 + $0x36c] sm:$0xf0]  ;;  %v4392_v26 = vld [vmem:[#allocation8 + $0x138] sm:$0xf0]  ;;  %v4534_v27 = vld [vmem:[#allocation8 + $0x248] sm:$0xf] }
 0x15e   :  { %v4671_v60 = vor.u32 %v5122_v53, %v4670_v52  ;;  %v5103_v52 = vld [vmem:[#allocation8 + $0x2d4] sm:$0xf0] }
 0x160   :  { %3040 = vmatpush.bf16.msra.mxu0 %v4343_v58  ;;  %v2006_v46 = vpop.f32.mrf.mxu2  ;;  %v1980_v55 = vpop.f32.mrf.mxu0  ;;  %v5051_v58 = vld [vmem:[#allocation8 + $0x134] sm:$0xf0]  ;;  %2973 = vmatpush.bf16.msra.mxu3 %v4671_v60  ;;  %v4312_v60 = vld [vmem:[#allocation8 + $0x98] sm:$0xf0] }
 0x161   :  { %3054 = vmatpush.bf16.msra.mxu1 %v4471_v39  ;;  %v2020_v1 = vpop.f32.mrf.mxu3  ;;  %v1981_v8 = vadd.f32 %v1980_v55, %v1967_v0  ;;  %v1994_v56 = vpop.f32.mrf.mxu1  ;;  %v4654_v39 = vld [vmem:[#allocation8 + $0x340] sm:$0xf]  ;;  %v2007_v37 = vadd.f32 %v2006_v46, %v1993_v54  ;;  %v4391_v10 = vor.u32 %v5051_v58, %v4390_v33  ;;  %v4456_v46 = vld [vmem:[#allocation8 + $0x1b8] sm:$0xf0]  ;;  %v4331_v54 = vor.u32 %v5033_v35, %v4328_v28  ;;  %v5132_v55 = vld [vmem:[#allocation8 + $0x3c4] sm:$0xf] }
 0x162   :  { %v4655_v5 = vor.u32 %v5118_v61, %v4654_v39  ;;  %v5061_v33 = vld [vmem:[#allocation8 + $0x18c] sm:$0xf]  ;;  %v4440_v58 = vld [vmem:[#allocation8 + $0x198] sm:$0xf0]  ;;  %v4315_v63 = vor.u32 %v5029_v49, %v4312_v60  ;;  %v5128_v39 = vld [vmem:[#allocation8 + $0x3a4] sm:$0xf] }
 0x163   :  { %v1995_v44 = vadd.f32 %v1994_v56, %v1981_v8  ;;  %v2021_v40 = vadd.f32 %v2020_v1, %v2007_v37  ;;  %v4720_v1 = vld [vmem:[#allocation8 + $0x3d0] sm:$0xf0]  ;;  %v4582_v8 = vld [vmem:[#allocation8 + $0x2a8] sm:$0xf]  ;;  %v5099_v56 = vld [vmem:[#allocation8 + $0x2b4] sm:$0xf0]  ;;  %v4443_v37 = vor.u32 %v5061_v33, %v4440_v58 }
 0x164   :  { %3041 = vmatpush.bf16.msra.mxu0 %v4327_v14  ;;  %v5041_v14 = vld [vmem:[#allocation8 + $0xec] sm:$0xf]  ;;  %2974 = vmatpush.bf16.msra.mxu3 %v4655_v5  ;;  %v4704_v61 = vld [vmem:[#allocation8 + $0x3b0] sm:$0xf0]  ;;  %v4424_v5 = vld [vmem:[#allocation8 + $0x178] sm:$0xf0] }
 0x165   :  { %3055 = vmatpush.bf16.msra.mxu1 %v4455_v43  ;;  %v4488_v43 = vld [vmem:[#allocation8 + $0x1f8] sm:$0xf0]  ;;  %v2139_v29 = vmax.f32 %v2021_v40, 0.0  ;;  %v5053_v40 = vld [vmem:[#allocation8 + $0x14c] sm:$0xf] }
 0x166   :  { %v4491_v21 = vor.u32 %v5073_v57, %v4488_v43  ;;  %v4299_v57 = vor.u32 %v5025_v2, %v4296_v4  ;;  %v5124_v43 = vld [vmem:[#allocation8 + $0x384] sm:$0xf]  ;;  %v5013_v28 = vld [vmem:[#allocation8 + $0xc] sm:$0xf]  ;;  %v4502_v60 = vld [vmem:[#allocation8 + $0x208] sm:$0xf] }
 0x167   :  { %v5116_v35 = vld [vmem:[#allocation8 + $0x344] sm:$0xf]  ;;  %v5079_v33 = vld [vmem:[#allocation8 + $0x214] sm:$0xf0] }
 0x168   :  { %3042 = vmatpush.bf16.msra.mxu0 %v4311_v19  ;;  %v2008_v7 = vpop.f32.mrf.mxu2  ;;  %v4363_v19 = vor.u32 %v5041_v14, %v4360_v6  ;;  %2975 = vmatpush.bf16.msra.mxu3 %v4639_v20  ;;  %v4566_v14 = vld [vmem:[#allocation8 + $0x288] sm:$0xf]  ;;  %v5095_v6 = vld [vmem:[#allocation8 + $0x294] sm:$0xf0]  ;;  %v4503_v2 = vor.u32 %v5079_v33, %v4502_v60 }
 0x169   :  { %3056 = vmatpush.bf16.msra.mxu1 %v4439_v24  ;;  %v2009_v15 = vadd.f32 %v2008_v7, %v1995_v44  ;;  %v2022_v16 = vpop.f32.mrf.mxu3  ;;  %v5069_v24 = vld [vmem:[#allocation8 + $0x1cc] sm:$0xf]  ;;  %v4707_v44 = vor.u32 %v5128_v39, %v4704_v61  ;;  %v4688_v7 = vld [vmem:[#allocation8 + $0x390] sm:$0xf0]  ;;  %v5108_v61 = vld [vmem:[#allocation8 + $0x304] sm:$0xf] }
 0x16a   :  { %v4475_v42 = vor.u32 %v5069_v24, %v4472_v62  ;;  %v4691_v20 = vor.u32 %v5124_v43, %v4688_v7  ;;  %v5017_v62 = vld [vmem:[#allocation8 + $0x2c] sm:$0xf]  ;;  %v5139_v60 = vld [vmem:[#allocation8 + $0x3f4] sm:$0xf0] }
 0x16b   :  { %v2023_v25 = vadd.f32 %v2022_v16, %v2009_v15  ;;  %v4408_v15 = vld [vmem:[#allocation8 + $0x158] sm:$0xf0]  ;;  %v4550_v16 = vld [vmem:[#allocation8 + $0x268] sm:$0xf] }
 0x16c   :  { %3043 = vmatpush.bf16.msra.mxu0 %v4295_v31  ;;  %2976 = vmatpush.bf16.msra.mxu3 %v4623_v41  ;;  %v4411_v24 = vor.u32 %v5053_v40, %v4408_v15  ;;  %v4656_v41 = vld [vmem:[#allocation8 + $0x350] sm:$0xf0] }
 0x16d   :  { %3057 = vmatpush.bf16.msra.mxu1 %v4423_v3  ;;  %v2143_v31 = vmax.f32 %v2023_v25, 0.0  ;;  %v5136_v3 = vld [vmem:[#allocation8 + $0x3e4] sm:$0xf] }
 0x16e   :  { %v4739_v53 = vor.u32 %v5136_v3, %v4736_v50  ;;  %v5045_v50 = vld [vmem:[#allocation8 + $0x10c] sm:$0xf] }
 0x16f   :  { %v5470_v0 = vpack.c.bf16 %v2143_v31, %v2139_v29  ;;  %v5087_v29 = vld [vmem:[#allocation8 + $0x254] sm:$0xf0]  ;;  %v4675_v31 = vor.u32 %v5120_v22, %v4672_v23 }
 0x170   :  { %3044 = vmatpush.bf16.msra.mxu0 %v4279_v51  ;;  %v4598_v51 = vld [vmem:[#allocation8 + $0x2c8] sm:$0xf]  ;;  %3025 = vmatpush.bf16.msrb.mxu3 %v4739_v53  ;;  %v4659_v53 = vor.u32 %v5116_v35, %v4656_v41  ;;  %v4536_v35 = vld [vmem:[#allocation8 + $0x258] sm:$0xf0] }
 0x171   :  { %3058 = vmatpush.bf16.msra.mxu1 %v4407_v9  ;;  %2963 = vmatmul.bf16.vlgmr.msra.gmra.mxu2 %v5470_v0  ;;  %v4459_v9 = vor.u32 %v5065_v36, %v4456_v46  ;;  %v4599_v59 = vor.u32 %v5103_v52, %v4598_v51  ;;  %v4248_v36 = vld [vmem:[#allocation8 + $0x18] sm:$0xf0]  ;;  %v4518_v51 = vld [vmem:[#allocation8 + $0x228] sm:$0xf]  ;;  %v5083_v52 = vld [vmem:[#allocation8 + $0x234] sm:$0xf0] }
 0x172   :  { %3067 = vmatpush.bf16.msra.mxu2 %v4615_v48  ;;  %v4535_v48 = vor.u32 %v5087_v29, %v4534_v27  ;;  %v4376_v46 = vld [vmem:[#allocation8 + $0x118] sm:$0xf0]  ;;  %v4519_v49 = vor.u32 %v5083_v52, %v4518_v51 }
 0x174   :  { %3045 = vmatpush.bf16.msra.mxu0 %v4263_v17  ;;  %v4723_v17 = vor.u32 %v5132_v55, %v4720_v1  ;;  %v4251_v55 = vor.u32 %v5013_v28, %v4248_v36  ;;  %v5112_v1 = vld [vmem:[#allocation8 + $0x324] sm:$0xf]  ;;  %v5081_v28 = vld [vmem:[#allocation8 + $0x22c] sm:$0xf]  ;;  %v4520_v36 = vld [vmem:[#allocation8 + $0x238] sm:$0xf0] }
 0x175   :  { %3059 = vmatpush.bf16.msra.mxu1 %v4391_v10  ;;  %v4583_v10 = vor.u32 %v5099_v56, %v4582_v8  ;;  %v5150_v8 = vld [vmem:[#allocation7] sm:$0xf]  ;;  %v4523_v52 = vor.u32 %v5081_v28, %v4520_v36  ;;  %v5486_v36 = vld [vmem:[#allocation10] sm:$0xf] }
 0x176   :  { %3068 = vmatpush.bf16.msra.mxu2 %v4599_v59  ;;  %3026 = vmatpush.bf16.msrb.mxu3 %v4723_v17  ;;  %v4379_v59 = vor.u32 %v5045_v50, %v4376_v46  ;;  %v364_v56 = vperm.slane %v5150_v8, 3  ;;  %v5105_v17 = vld [vmem:[#allocation8 + $0x2ec] sm:$0xf] }
 0x178   :  { %3046 = vmatpush.bf16.msra.mxu0 %v4247_v11  ;;  %v4427_v11 = vor.u32 %v5057_v30, %v4424_v5  ;;  %v2034_v3 = vpop.f32.mrf.mxu0 }
 0x179   :  { %3060 = vmatpush.bf16.msra.mxu1 %v4375_v12  ;;  %v4567_v12 = vor.u32 %v5095_v6, %v4566_v14  ;;  %v2035_v5 = vadd.f32 %v2034_v3, %v364_v56  ;;  %v5101_v6 = vld [vmem:[#allocation8 + $0x2cc] sm:$0xf] }
 0x17a   :  { %3069 = vmatpush.bf16.msra.mxu2 %v4583_v10  ;;  %3027 = vmatpush.bf16.msrb.mxu3 %v4707_v44  ;;  %v4600_v44 = vld [vmem:[#allocation8 + $0x2d8] sm:$0xf0] }
 0x17b   :  { %3047 = vmatmul.bf16.vlgmr.msra.gmra.mxu0 %v5461_v38  ;;  %v4603_v43 = vor.u32 %v5101_v6, %v4600_v44  ;;  %v5123_v6 = vld [vmem:[#allocation8 + $0x374] sm:$0xf0] }
 0x17c   :  { %3095 = vmatpush.bf16.msrb.mxu0 %v4363_v19  ;;  %3061 = vmatmul.bf16.vlgmr.msra.gmra.mxu1 %v5463_v45  ;;  %v5091_v19 = vld [vmem:[#allocation8 + $0x274] sm:$0xf0] }
 0x17d   :  { %3109 = vmatpush.bf16.msrb.mxu1 %v4491_v21  ;;  %v4283_v21 = vor.u32 %v5021_v47, %v4280_v13  ;;  %v4551_v25 = vor.u32 %v5091_v19, %v4550_v16  ;;  %v4584_v47 = vld [vmem:[#allocation8 + $0x2b8] sm:$0xf0] }
 0x17e   :  { %3070 = vmatpush.bf16.msra.mxu2 %v4567_v12  ;;  %3028 = vmatpush.bf16.msrb.mxu3 %v4691_v20  ;;  %v5097_v12 = vld [vmem:[#allocation8 + $0x2ac] sm:$0xf] }
 0x17f   :  { %v4587_v40 = vor.u32 %v5097_v12, %v4584_v47  ;;  %v5093_v20 = vld [vmem:[#allocation8 + $0x28c] sm:$0xf]  ;;  %v4630_v47 = vld [vmem:[#allocation8 + $0x308] sm:$0xf] }
 0x180   :  { %3096 = vmatpush.bf16.msrb.mxu0 %v4347_v34  ;;  %v4267_v34 = vor.u32 %v5017_v62, %v4264_v32  ;;  %v2062_v39 = vpop.f32.mrf.mxu2  ;;  %v2036_v14 = vpop.f32.mrf.mxu0  ;;  %v4552_v62 = vld [vmem:[#allocation8 + $0x278] sm:$0xf0] }
 0x181   :  { %3110 = vmatpush.bf16.msrb.mxu1 %v4475_v42  ;;  %3019 = vmatmul.bf16.vlgmr.msrb.gmra.mxu2 %v5470_v0  ;;  %v4395_v42 = vor.u32 %v5049_v18, %v4392_v26  ;;  %v2076_v10 = vpop.f32.mrf.mxu3 }
 0x182   :  { %3071 = vmatpush.bf16.msra.mxu2 %v4551_v25  ;;  %3029 = vmatpush.bf16.msrb.mxu3 %v4675_v31  ;;  %v5089_v25 = vld [vmem:[#allocation8 + $0x26c] sm:$0xf] }
 0x183   :  { %v4555_v26 = vor.u32 %v5089_v25, %v4552_v62  ;;  %v4696_v25 = vld [vmem:[#allocation8 + $0x398] sm:$0xf0] }
 0x184   :  { %3097 = vmatpush.bf16.msrb.mxu0 %v4331_v54  ;;  %v2048_v54 = vpop.f32.mrf.mxu1 }
 0x185   :  { %3111 = vmatpush.bf16.msrb.mxu1 %v4459_v9  ;;  %v4640_v9 = vld [vmem:[#allocation8 + $0x330] sm:$0xf0]  ;;  %v2049_v7 = vadd.f32 %v2048_v54, %v2035_v5 }
 0x186   :  { %3072 = vmatpush.bf16.msra.mxu2 %v4535_v48  ;;  %3030 = vmatpush.bf16.msrb.mxu3 %v4659_v53  ;;  %v4643_v58 = vor.u32 %v5112_v1, %v4640_v9  ;;  %v4504_v1 = vld [vmem:[#allocation8 + $0x218] sm:$0xf0] }
 0x187   :  { %v2063_v15 = vadd.f32 %v2062_v39, %v2049_v7  ;;  %v5135_v39 = vld [vmem:[#allocation8 + $0x3d4] sm:$0xf0] }
 0x188   :  { %3098 = vmatpush.bf16.msrb.mxu0 %v4315_v63  ;;  %v4616_v63 = vld [vmem:[#allocation8 + $0x2f8] sm:$0xf0]  ;;  %v2064_v13 = vpop.f32.mrf.mxu2 }
 0x189   :  { %3112 = vmatpush.bf16.msrb.mxu1 %v4443_v37  ;;  %v4624_v37 = vld [vmem:[#allocation8 + $0x310] sm:$0xf0]  ;;  %v4619_v4 = vor.u32 %v5105_v17, %v4616_v63  ;;  %v2078_v16 = vpop.f32.mrf.mxu3  ;;  %v2077_v23 = vadd.f32 %v2076_v10, %v2063_v15  ;;  %v4726_v63 = vld [vmem:[#allocation8 + $0x3c8] sm:$0xf]  ;;  %v5131_v10 = vld [vmem:[#allocation8 + $0x3b4] sm:$0xf0] }
 0x18a   :  { %3073 = vmatpush.bf16.msra.mxu2 %v4519_v49  ;;  %3031 = vmatpush.bf16.msrb.mxu3 %v4643_v58  ;;  %v4627_v30 = vor.u32 %v5108_v61, %v4624_v37  ;;  %v4742_v49 = vld [vmem:[#allocation8 + $0x3e8] sm:$0xf]  ;;  %v4727_v61 = vor.u32 %v5135_v39, %v4726_v63  ;;  %v4744_v15 = vld [vmem:[#allocation8 + $0x3f8] sm:$0xf0] }
 0x18b   :  { %v4710_v37 = vld [vmem:[#allocation8 + $0x3a8] sm:$0xf] }
 0x18c   :  { %3099 = vmatpush.bf16.msrb.mxu0 %v4299_v57  ;;  %v2050_v57 = vpop.f32.mrf.mxu1 }
 0x18d   :  { %3113 = vmatpush.bf16.msrb.mxu1 %v4427_v11  ;;  %v2037_v11 = vadd.f32 %v2036_v14, %v364_v56  ;;  %v4743_v56 = vor.u32 %v5139_v60, %v4742_v49  ;;  %v4678_v14 = vld [vmem:[#allocation8 + $0x368] sm:$0xf] }
 0x18e   :  { %3074 = vmatpush.bf16.msra.mxu2 %v4503_v2  ;;  %3032 = vmatpush.bf16.msrb.mxu3 %v4627_v30  ;;  %v4711_v2 = vor.u32 %v5131_v10, %v4710_v37  ;;  %v5127_v30 = vld [vmem:[#allocation8 + $0x394] sm:$0xf0]  ;;  %v4679_v44 = vor.u32 %v5123_v6, %v4678_v14 }
 0x190   :  { %3100 = vmatpush.bf16.msrb.mxu0 %v4283_v21 }
 0x191   :  { %3114 = vmatpush.bf16.msrb.mxu1 %v4411_v24  ;;  %3075 = vmatmul.bf16.vlgmr.msra.gmra.mxu2 %v5470_v0 }
 0x192   :  { %3123 = vmatpush.bf16.msrb.mxu2 %v4619_v4  ;;  %v4694_v4 = vld [vmem:[#allocation8 + $0x388] sm:$0xf] }
 0x193   :  { %v4695_v5 = vor.u32 %v5127_v30, %v4694_v4 }
 0x194   :  { %3101 = vmatpush.bf16.msrb.mxu0 %v4267_v34  ;;  %v5085_v34 = vld [vmem:[#allocation8 + $0x24c] sm:$0xf] }
 0x195   :  { %3115 = vmatpush.bf16.msrb.mxu1 %v4395_v42  ;;  %v4539_v42 = vor.u32 %v5085_v34, %v4536_v35  ;;  %v5113_v34 = vld [vmem:[#allocation8 + $0x32c] sm:$0xf]  ;;  %v4648_v35 = vld [vmem:[#allocation8 + $0x338] sm:$0xf0] }
 0x196   :  { %3124 = vmatpush.bf16.msrb.mxu2 %v4603_v43  ;;  %v5119_v43 = vld [vmem:[#allocation8 + $0x354] sm:$0xf0] }
 0x198   :  { %3102 = vmatpush.bf16.msrb.mxu0 %v4251_v55  ;;  %v2090_v19 = vpop.f32.mrf.mxu0  ;;  %v5077_v55 = vld [vmem:[#allocation8 + $0x20c] sm:$0xf] }
 0x199   :  { %3116 = vmatpush.bf16.msrb.mxu1 %v4379_v59  ;;  %v2104_v21 = vpop.f32.mrf.mxu1  ;;  %v2091_v32 = vadd.f32 %v2090_v19, %v2077_v23  ;;  %v4507_v33 = vor.u32 %v5077_v55, %v4504_v1  ;;  %v5133_v19 = vld [vmem:[#allocation8 + $0x3cc] sm:$0xf] }
 0x19a   :  { %3125 = vmatpush.bf16.msrb.mxu2 %v4587_v40  ;;  %v5137_v40 = vld [vmem:[#allocation8 + $0x3ec] sm:$0xf] }
 0x19b   :  { %3103 = vmatmul.bf16.vlgmr.msrb.gmra.mxu0 %v5461_v38  ;;  %v2051_v38 = vadd.f32 %v2050_v57, %v2037_v11  ;;  %v2105_v41 = vadd.f32 %v2104_v21, %v2091_v32  ;;  %v4662_v57 = vld [vmem:[#allocation8 + $0x348] sm:$0xf]  ;;  %v5129_v21 = vld [vmem:[#allocation8 + $0x3ac] sm:$0xf] }
 0x19c   :  { %3117 = vmatmul.bf16.vlgmr.msrb.gmra.mxu1 %v5463_v45  ;;  %v4568_v45 = vld [vmem:[#allocation8 + $0x298] sm:$0xf0]  ;;  %v4663_v7 = vor.u32 %v5119_v43, %v4662_v57  ;;  %v4646_v11 = vld [vmem:[#allocation8 + $0x328] sm:$0xf]  ;;  %v5121_v32 = vld [vmem:[#allocation8 + $0x36c] sm:$0xf] }
 0x19d   :  { %v4571_v22 = vor.u32 %v5093_v20, %v4568_v45  ;;  %v2065_v24 = vadd.f32 %v2064_v13, %v2051_v38  ;;  %v5111_v13 = vld [vmem:[#allocation8 + $0x314] sm:$0xf0]  ;;  %v4728_v20 = vld [vmem:[#allocation8 + $0x3d8] sm:$0xf0] }
 0x19e   :  { %v4631_v38 = vor.u32 %v5111_v13, %v4630_v47  ;;  %v4731_v45 = vor.u32 %v5133_v19, %v4728_v20 }
 0x19f   :  { %3126 = vmatpush.bf16.msrb.mxu2 %v4571_v22  ;;  %v2079_v27 = vadd.f32 %v2078_v16, %v2065_v24  ;;  %v4747_v16 = vor.u32 %v5137_v40, %v4744_v15  ;;  %v4712_v22 = vld [vmem:[#allocation8 + $0x3b8] sm:$0xf0]  ;;  %v5125_v24 = vld [vmem:[#allocation8 + $0x38c] sm:$0xf] }
 0x1a0   :  { %v2118_v18 = vpop.f32.mrf.mxu2  ;;  %v2092_v31 = vpop.f32.mrf.mxu0  ;;  %v4715_v23 = vor.u32 %v5129_v21, %v4712_v22  ;;  %v4699_v62 = vor.u32 %v5125_v24, %v4696_v25 }
 0x1a1   :  { %v2132_v29 = vpop.f32.mrf.mxu3  ;;  %v2093_v3 = vadd.f32 %v2092_v31, %v2079_v27  ;;  %v2119_v48 = vadd.f32 %v2118_v18, %v2105_v41  ;;  %v2106_v50 = vpop.f32.mrf.mxu1  ;;  %v4680_v18 = vld [vmem:[#allocation8 + $0x378] sm:$0xf0]  ;;  %v5117_v27 = vld [vmem:[#allocation8 + $0x34c] sm:$0xf]  ;;  %v4651_v41 = vor.u32 %v5113_v34, %v4648_v35 }
 0x1a3   :  { %3127 = vmatpush.bf16.msrb.mxu2 %v4555_v26  ;;  %v2107_v46 = vadd.f32 %v2106_v50, %v2093_v3  ;;  %v2133_v53 = vadd.f32 %v2132_v29, %v2119_v48  ;;  %v4683_v26 = vor.u32 %v5121_v32, %v4680_v18  ;;  %v4664_v29 = vld [vmem:[#allocation8 + $0x358] sm:$0xf0]  ;;  %v5109_v3 = vld [vmem:[#allocation8 + $0x30c] sm:$0xf]  ;;  %v2282_v18 = vperm.slane %v5486_v36, 3 }
 0x1a4   :  { %v4667_v31 = vor.u32 %v5117_v27, %v4664_v29 }
 0x1a5   :  { %v2140_v58 = vmax.f32 %v2133_v53, 0.0 }
 0x1a7   :  { %3128 = vmatpush.bf16.msrb.mxu2 %v4539_v42  ;;  %v4632_v42 = vld [vmem:[#allocation8 + $0x318] sm:$0xf0] }
 0x1a8   :  { %v2120_v51 = vpop.f32.mrf.mxu2  ;;  %v4635_v48 = vor.u32 %v5109_v3, %v4632_v42 }
 0x1a9   :  { %v2121_v54 = vadd.f32 %v2120_v51, %v2107_v46  ;;  %v2134_v9 = vpop.f32.mrf.mxu3  ;;  %v2279_v46 = vperm.slane %v5486_v36, 0 }
 0x1ab   :  { %v2135_v59 = vadd.f32 %v2134_v9, %v2121_v54  ;;  %3129 = vmatpush.bf16.msrb.mxu2 %v4523_v52 }
 0x1ad   :  { %v2144_v8 = vmax.f32 %v2135_v59, 0.0 }
 0x1af   :  { %v5479_v17 = vpack.c.bf16 %v2144_v8, %v2140_v58  ;;  %3130 = vmatpush.bf16.msrb.mxu2 %v4507_v33  ;;  %v2280_v8 = vperm.slane %v5486_v36, 1 }
 0x1b1   :  { %2977 = vmatmul.bf16.vlgmr.msra.gmra.mxu3 %v5479_v17 }
 0x1b2   :  { %3081 = vmatpush.bf16.msra.mxu3 %v4743_v56  ;;  %3131 = vmatmul.bf16.vlgmr.msrb.gmra.mxu2 %v5470_v0  ;;  %v5115_v0 = vld [vmem:[#allocation8 + $0x334] sm:$0xf0] }
 0x1b3   :  { %v4647_v12 = vor.u32 %v5115_v0, %v4646_v11 }
 0x1b6   :  { %3082 = vmatpush.bf16.msra.mxu3 %v4727_v61 }
 0x1b8   :  { %v2936_v28 = vpop.f32.mrf.mxu0 }
 0x1b9   :  { %v2950_v51 = vpop.f32.mrf.mxu1  ;;  %v2937_v52 = vadd.f32 %v2936_v28, %v2279_v46 }
 0x1ba   :  { %3083 = vmatpush.bf16.msra.mxu3 %v4711_v2 }
 0x1bb   :  { %v2951_v55 = vadd.f32 %v2950_v51, %v2937_v52 }
 0x1be   :  { %3084 = vmatpush.bf16.msra.mxu3 %v4695_v5 }
 0x1c0   :  { %v2938_v53 = vpop.f32.mrf.mxu0 }
 0x1c1   :  { %3033 = vmatmul.bf16.vlgmr.msrb.gmra.mxu3 %v5479_v17  ;;  %v2952_v9 = vpop.f32.mrf.mxu1  ;;  %v2939_v49 = vadd.f32 %v2938_v53, %v2279_v46 }
 0x1c2   :  { %3085 = vmatpush.bf16.msra.mxu3 %v4679_v44 }
 0x1c3   :  { %v2953_v58 = vadd.f32 %v2952_v9, %v2939_v49 }
 0x1c6   :  { %3086 = vmatpush.bf16.msra.mxu3 %v4663_v7  ;;  %v2281_v7 = vperm.slane %v5486_v36, 2 }
 0x1ca   :  { %3087 = vmatpush.bf16.msra.mxu3 %v4647_v12 }
 0x1ce   :  { %3088 = vmatpush.bf16.msra.mxu3 %v4631_v38 }
 0x1d1   :  { %3089 = vmatmul.bf16.vlgmr.msra.gmra.mxu3 %v5479_v17 }
 0x1d2   :  { %3137 = vmatpush.bf16.msrb.mxu3 %v4747_v16 }
 0x1d6   :  { %3138 = vmatpush.bf16.msrb.mxu3 %v4731_v45 }
 0x1d8   :  { %v2992_v33 = vpop.f32.mrf.mxu0 }
 0x1d9   :  { %v3006_v63 = vpop.f32.mrf.mxu1  ;;  %v2993_v61 = vadd.f32 %v2992_v33, %v2280_v8 }
 0x1da   :  { %3139 = vmatpush.bf16.msrb.mxu3 %v4715_v23 }
 0x1db   :  { %v3007_v2 = vadd.f32 %v3006_v63, %v2993_v61 }
 0x1de   :  { %3140 = vmatpush.bf16.msrb.mxu3 %v4699_v62 }
 0x1e0   :  { %v2994_v10 = vpop.f32.mrf.mxu0 }
 0x1e1   :  { %v2995_v14 = vadd.f32 %v2994_v10, %v2280_v8  ;;  %v3008_v44 = vpop.f32.mrf.mxu1 }
 0x1e2   :  { %3141 = vmatpush.bf16.msrb.mxu3 %v4683_v26 }
 0x1e3   :  { %v3009_v43 = vadd.f32 %v3008_v44, %v2995_v14 }
 0x1e6   :  { %3142 = vmatpush.bf16.msrb.mxu3 %v4667_v31 }
 0x1ea   :  { %3143 = vmatpush.bf16.msrb.mxu3 %v4651_v41 }
 0x1ee   :  { %3144 = vmatpush.bf16.msrb.mxu3 %v4635_v48 }
 0x1f1   :  { %3145 = vmatmul.bf16.vlgmr.msrb.gmra.mxu3 %v5479_v17 }
 0x1f4   :  { %v2964_v50 = vpop.f32.mrf.mxu2 }
 0x1f5   :  { %v2965_v1 = vadd.f32 %v2964_v50, %v2951_v55 }
 0x1f8   :  { %v3048_v57 = vpop.f32.mrf.mxu0 }
 0x1f9   :  { %v3049_v12 = vadd.f32 %v3048_v57, %v2281_v7  ;;  %v3062_v13 = vpop.f32.mrf.mxu1 }
 0x1fb   :  { %v3063_v15 = vadd.f32 %v3062_v13, %v3049_v12 }
 0x1fc   :  { %v2966_v54 = vpop.f32.mrf.mxu2 }
 0x1fd   :  { %v2967_v17 = vadd.f32 %v2966_v54, %v2953_v58 }
 0x200   :  { %v3050_v38 = vpop.f32.mrf.mxu0 }
 0x201   :  { %v3051_v20 = vadd.f32 %v3050_v38, %v2281_v7  ;;  %v3064_v21 = vpop.f32.mrf.mxu1 }
 0x203   :  { %v3065_v23 = vadd.f32 %v3064_v21, %v3051_v20 }
 0x204   :  { %v3020_v56 = vpop.f32.mrf.mxu2 }
 0x205   :  { %v3021_v4 = vadd.f32 %v3020_v56, %v3007_v2 }
 0x20c   :  { %v3022_v30 = vpop.f32.mrf.mxu2 }
 0x20d   :  { %v3023_v11 = vadd.f32 %v3022_v30, %v3009_v43 }
 0x214   :  { %v3076_v40 = vpop.f32.mrf.mxu2 }
 0x215   :  { %v3077_v16 = vadd.f32 %v3076_v40, %v3063_v15 }
 0x218   :  { %v3104_v32 = vpop.f32.mrf.mxu0 }
 0x219   :  { %v3105_v26 = vadd.f32 %v3104_v32, %v2282_v18  ;;  %v3118_v27 = vpop.f32.mrf.mxu1 }
 0x21b   :  { %v3119_v31 = vadd.f32 %v3118_v27, %v3105_v26 }
 0x21c   :  { %v3078_v22 = vpop.f32.mrf.mxu2 }
 0x21d   :  { %v3079_v24 = vadd.f32 %v3078_v22, %v3065_v23 }
 0x220   :  { %v3106_v34 = vpop.f32.mrf.mxu0 }
 0x221   :  { %v3107_v3 = vadd.f32 %v3106_v34, %v2282_v18  ;;  %v3120_v48 = vpop.f32.mrf.mxu1 }
 0x223   :  { %v3121_v50 = vadd.f32 %v3120_v48, %v3107_v3 }
 0x234   :  { %v2978_v59 = vpop.f32.mrf.mxu3 }
 0x235   :  { %v2979_v60 = vadd.f32 %v2978_v59, %v2965_v1  ;;  %v3132_v29 = vpop.f32.mrf.mxu2 }
 0x236   :  { %v3133_v35 = vadd.f32 %v3132_v29, %v3119_v31 }
 0x237   :  { %3151 = vst [vmem:[#allocation11] sm:$0xff] %v2979_v60 }
 0x23c   :  { %v2980_v39 = vpop.f32.mrf.mxu3 }
 0x23d   :  { %v2981_v37 = vadd.f32 %v2980_v39, %v2967_v17  ;;  %v3134_v28 = vpop.f32.mrf.mxu2 }
 0x23e   :  { %v3135_v36 = vadd.f32 %v3134_v28, %v3121_v50 }
 0x23f   :  { %3155 = vst [vmem:[#allocation11 + $0x20] sm:$0xff] %v2981_v37 }
 0x244   :  { %v3034_v5 = vpop.f32.mrf.mxu3 }
 0x245   :  { %v3035_v6 = vadd.f32 %v3034_v5, %v3021_v4 }
 0x247   :  { %3152 = vst [vmem:[#allocation11 + $0x8] sm:$0xff] %v3035_v6 }
 0x24c   :  { %v3036_v0 = vpop.f32.mrf.mxu3 }
 0x24d   :  { %v3037_v47 = vadd.f32 %v3036_v0, %v3023_v11 }
 0x24f   :  { %3156 = vst [vmem:[#allocation11 + $0x28] sm:$0xff] %v3037_v47 }
 0x254   :  { %v3090_v19 = vpop.f32.mrf.mxu3 }
 0x255   :  { %v3091_v45 = vadd.f32 %v3090_v19, %v3077_v16 }
 0x257   :  { %3153 = vst [vmem:[#allocation11 + $0x10] sm:$0xff] %v3091_v45 }
 0x25c   :  { %v3092_v25 = vpop.f32.mrf.mxu3 }
 0x25d   :  { %v3093_v62 = vadd.f32 %v3092_v25, %v3079_v24 }
 0x25f   :  { %3157 = vst [vmem:[#allocation11 + $0x30] sm:$0xff] %v3093_v62 }
 0x274   :  { %v3146_v41 = vpop.f32.mrf.mxu3 }
 0x275   :  { %v3147_v42 = vadd.f32 %v3146_v41, %v3133_v35 }
 0x277   :  { %3154 = vst [vmem:[#allocation11 + $0x18] sm:$0xff] %v3147_v42 }
 0x27c   :  { %v3148_v46 = vpop.f32.mrf.mxu3 }
 0x27d   :  { %v3149_v51 = vadd.f32 %v3148_v46, %v3135_v36 }
 0x27f   :  { %3158 = vst [vmem:[#allocation11 + $0x38] sm:$0xff] %v3149_v51 }
 0x280   :  { %3171 = dma.vmem_to_hbm [thread:$0]  %s3164_s4, 1024, %s3166_s21, [#allocation4], %s5308_s11, %s5308_s11, %s5309_s12  }
 0x281   :  { %5301 = dma.done.wait [#allocation4], 1024  }
 0x282   :  { %5302 = vsyncadd [#allocation4], 4294966272 }
 0x283   :  { %3176 = vsyncpa [#allocation3], 1 }
 0x284   :  { %3177 = vsyncpa [#allocation6], 1 }
 0x285   :  { %3178 = vsyncpa [#allocation9], 1 }
 0x286   :  { %3179 = vsyncpa [#allocation4], 1 }

</bundles_post_ra>
